<compile_context>
chip_gen: v7x
topology: tpu7x:2x2x1
jax: 0.10.0
libtpu: 0.0.40
codegen_flags: <defaults>
</compile_context>

<pallas_src>
import jax
import jax.numpy as jnp
from jax.experimental import pallas as pl
from jax.experimental.pallas import tpu as pltpu

HIDDEN = 1024       # BERT hidden size (fc1 input)
FC1_OUT = 128
NUM_CLASSES = 9
FC2_PAD = 128       # lane-dense padded fc2 output width


def _head_kernel(h_ref, wp_ref, bp_ref, w1_ref, b1_ref, w2_ref, b2_ref, o_ref):
    """Straight-line fused head: pooler -> tanh -> fc1 -> relu -> fc2."""
    # BERT pooler: [B, 1024] @ [1024, 1024] (bf16 operands, f32 accumulate).
    pooled = jnp.tanh(
        jnp.dot(h_ref[...], wp_ref[...], preferred_element_type=jnp.float32)
        + bp_ref[...])                                           # [B, 1024] f32

    # fc1 + ReLU (bf16 operands into the MXU, f32 accumulate / epilogue).
    x = jnp.dot(pooled.astype(jnp.bfloat16), w1_ref[...],
                preferred_element_type=jnp.float32) + b1_ref[...]
    x = jnp.maximum(x, 0.0)                                      # [B, 128]

    # Dropout(p=0.2): inference-mode identity (matches PyTorch eval()).
    # TODO(synk): training-mode dropout would use pltpu.prng_seed +
    # pltpu.prng_random_bits masking with the 1/0.8 rescale.

    # fc2 on the lane-dense padded weight; columns >= NUM_CLASSES are zero.
    out = jnp.dot(x.astype(jnp.bfloat16), w2_ref[...],
                  preferred_element_type=jnp.float32) + b2_ref[...]
    o_ref[...] = out.astype(o_ref.dtype)                         # [B, 128]


@jax.jit
def classify_news_head(h, wp_bf, bp, w1_bf, b1, w2_pad, b2_pad):
    """h: [B, 1024] pre-pooler hidden state (f32). Returns [B, 9] logits.

    Weight operands are expected pre-cast (bf16) / pre-padded (see
    prepare_head_weights) so no per-call convert/pad HLOs run here.
    """
    B = h.shape[0]
    # h is produced fresh each call; the [B, 1024] cast is ~16 KiB, negligible.
    h_bf = h.astype(jnp.bfloat16)

    bytes_accessed = (
        h_bf.size * 2 + wp_bf.size * 2 + bp.size * 4 + w1_bf.size * 2
        + b1.size * 4 + w2_pad.size * 2 + b2_pad.size * 4 + B * FC2_PAD * 4)
    flops = (2 * B * HIDDEN * HIDDEN          # pooler
             + 2 * B * HIDDEN * FC1_OUT       # fc1
             + 2 * B * FC1_OUT * FC2_PAD)     # fc2 (padded)

    vmem = pltpu.MemorySpace.VMEM
    out = pl.pallas_call(
        _head_kernel,
        out_shape=jax.ShapeDtypeStruct((B, FC2_PAD), jnp.float32),
        # No grid: single invocation, whole operands resident in VMEM
        # (~2.3 MiB total, single-buffered -> far under the scoped default
        # on v5e/v6e/v7x).
        in_specs=[pl.BlockSpec(memory_space=vmem)] * 7,
        out_specs=pl.BlockSpec(memory_space=vmem),
        cost_estimate=pl.CostEstimate(
            flops=flops,
            transcendentals=B * HIDDEN,
            bytes_accessed=bytes_accessed),
    )(h_bf, wp_bf, bp, w1_bf, b1, w2_pad, b2_pad)

    return out[:, :NUM_CLASSES]


def prepare_head_weights(params):
    """One-time weight prep (outside the jitted forward): bf16 cast + fc2 pad.

    Keeps the invariant that padded columns >= NUM_CLASSES of w2_pad/b2_pad
    are zero so the wrapper's [:, :9] slice is exact.
    """
    w2_pad = jnp.zeros((FC1_OUT, FC2_PAD), jnp.bfloat16)
    w2_pad = w2_pad.at[:, :NUM_CLASSES].set(params["w2"].astype(jnp.bfloat16))
    b2_pad = jnp.zeros((1, FC2_PAD), jnp.float32)
    b2_pad = b2_pad.at[:, :NUM_CLASSES].set(params["b2"])
    return {
        "wp_bf": params["wp"].astype(jnp.bfloat16),
        "bp": params["bp"],
        "w1_bf": params["w1"].astype(jnp.bfloat16),
        "b1": params["b1"],
        "w2_pad": w2_pad,
        "b2_pad": b2_pad,
    }


def classify_news_forward(input_ids, params, head_w):
    """Synthetic ClassifyNews forward: embed + mean-pool (glue) then Pallas head."""
    emb = params["emb"][input_ids]            # [B, S, 1024] gather (plain JAX glue)
    h = jnp.mean(emb, axis=1)                 # [B, 1024]
    return classify_news_head(
        h,
        head_w["wp_bf"], head_w["bp"],
        head_w["w1_bf"], head_w["b1"],
        head_w["w2_pad"], head_w["b2_pad"],
    )


def init_params(key, vocab=1000):
    ks = jax.random.split(key, 4)
    scale = 0.02
    return {
        "emb": scale * jax.random.normal(ks[0], (vocab, HIDDEN), jnp.float32),
        # BERT pooler dense: [1024, 1024] (stored as [in, out])
        "wp": scale * jax.random.normal(ks[1], (HIDDEN, HIDDEN), jnp.float32),
        "bp": jnp.zeros((1, HIDDEN), jnp.float32),
        # fc1: Linear(1024, 128)
        "w1": scale * jax.random.normal(ks[2], (HIDDEN, FC1_OUT), jnp.float32),
        "b1": 0.01 * jnp.ones((1, FC1_OUT), jnp.float32),
        # fc2: Linear(128, 9)
        "w2": scale * jax.random.normal(ks[3], (FC1_OUT, NUM_CLASSES), jnp.float32),
        "b2": jnp.zeros((1, NUM_CLASSES), jnp.float32),
    }


def _reference_bf16(h, params):
    """Pure-JAX reference mirroring the kernel's bf16 operand streaming.

    Note: pooled is rounded to bf16 before fc1 (as in the kernel), which is a
    deliberate, documented deviation from a pure-f32 PyTorch head.
    """
    bf = jnp.bfloat16
    pooled = jnp.tanh(
        jnp.dot(h.astype(bf), params["wp"].astype(bf),
                preferred_element_type=jnp.float32) + params["bp"])
    x = jnp.dot(pooled.astype(bf), params["w1"].astype(bf),
                preferred_element_type=jnp.float32) + params["b1"]
    x = jnp.maximum(x, 0.0)
    return jnp.dot(x.astype(bf), params["w2"].astype(bf),
                   preferred_element_type=jnp.float32) + params["b2"]


def _reference_f32(h, params):
    pooled = jnp.tanh(h @ params["wp"] + params["bp"])
    x = jnp.maximum(pooled @ params["w1"] + params["b1"], 0.0)
    return x @ params["w2"] + params["b2"]


if __name__ == "__main__":
    key = jax.random.PRNGKey(0)
    pkey, dkey = jax.random.split(key)

    params = init_params(pkey, vocab=1000)
    head_w = prepare_head_weights(params)     # one-time cast/pad, outside jit

    batch, seq = 8, 16
    input_ids = jax.random.randint(dkey, (batch, seq), minval=0, maxval=1000)

    logits = classify_news_forward(input_ids, params, head_w)
    logits = jax.block_until_ready(logits)

    # References.
    emb = params["emb"][input_ids]
    h = jnp.mean(emb, axis=1)
    ref_bf = _reference_bf16(h, params)   # mirrors the kernel's bf16 streaming
    ref_f32 = _reference_f32(h, params)   # full-precision sanity check (loose)

    assert logits.shape == (batch, NUM_CLASSES), logits.shape
    assert jnp.allclose(logits, ref_bf, atol=2e-4, rtol=1e-2), \
        "mismatch vs bf16-streaming reference"
    assert jnp.allclose(logits, ref_f32, atol=2e-3, rtol=5e-2), \
        "mismatch vs f32 reference"

    print("KERNEL_OK")
</pallas_src>

<mosaic_0001>
module attributes {stable_mosaic.version = 11 : i64} {
  func.func @_head_kernel(%arg0: memref<8x1024xbf16, #tpu.memory_space<vmem>>, %arg1: memref<1024x1024xbf16, #tpu.memory_space<vmem>>, %arg2: memref<1x1024xf32, #tpu.memory_space<vmem>>, %arg3: memref<1024x128xbf16, #tpu.memory_space<vmem>>, %arg4: memref<1x128xf32, #tpu.memory_space<vmem>>, %arg5: memref<128x128xbf16, #tpu.memory_space<vmem>>, %arg6: memref<1x128xf32, #tpu.memory_space<vmem>>, %arg7: memref<8x128xf32, #tpu.memory_space<vmem>>) attributes {dimension_semantics = [], scalar_prefetch = 0 : i64, scratch_operands = 0 : i64, tpu.core_type = #tpu.core_type<tc>} {
    %c0 = arith.constant 0 : index
    %c0_0 = arith.constant 0 : index
    %0 = vector.load %arg0[%c0, %c0_0] : memref<8x1024xbf16, #tpu.memory_space<vmem>>, vector<8x1024xbf16>
    %c0_1 = arith.constant 0 : index
    %c0_2 = arith.constant 0 : index
    %1 = vector.load %arg1[%c0_1, %c0_2] : memref<1024x1024xbf16, #tpu.memory_space<vmem>>, vector<1024x1024xbf16>
    %cst = arith.constant dense<0.000000e+00> : vector<8x1024xf32>
    %2 = tpu.matmul %0, %1, %cst {dimension_numbers = #tpu.dot_dimension_numbers<[1], [0], [0], [1], [0, 0, 1, 1], [], []>} : vector<8x1024xbf16>, vector<1024x1024xbf16>, vector<8x1024xf32> -> vector<8x1024xf32>
    %c0_3 = arith.constant 0 : index
    %c0_4 = arith.constant 0 : index
    %3 = vector.load %arg2[%c0_3, %c0_4] : memref<1x1024xf32, #tpu.memory_space<vmem>>, vector<1x1024xf32>
    %4 = vector.broadcast %3 : vector<1x1024xf32> to vector<8x1024xf32>
    %5 = arith.addf %2, %4 : vector<8x1024xf32>
    %6 = math.tanh %5 : vector<8x1024xf32>
    %7 = arith.truncf %6 : vector<8x1024xf32> to vector<8x1024xbf16>
    %c0_5 = arith.constant 0 : index
    %c0_6 = arith.constant 0 : index
    %8 = vector.load %arg3[%c0_5, %c0_6] : memref<1024x128xbf16, #tpu.memory_space<vmem>>, vector<1024x128xbf16>
    %cst_7 = arith.constant dense<0.000000e+00> : vector<8x128xf32>
    %9 = tpu.matmul %7, %8, %cst_7 {dimension_numbers = #tpu.dot_dimension_numbers<[1], [0], [0], [1], [0, 0, 1, 1], [], []>} : vector<8x1024xbf16>, vector<1024x128xbf16>, vector<8x128xf32> -> vector<8x128xf32>
    %c0_8 = arith.constant 0 : index
    %c0_9 = arith.constant 0 : index
    %10 = vector.load %arg4[%c0_8, %c0_9] : memref<1x128xf32, #tpu.memory_space<vmem>>, vector<1x128xf32>
    %11 = vector.broadcast %10 : vector<1x128xf32> to vector<8x128xf32>
    %12 = arith.addf %9, %11 : vector<8x128xf32>
    %cst_10 = arith.constant 0.000000e+00 : f32
    %13 = vector.broadcast %cst_10 : f32 to vector<8x128xf32>
    %14 = arith.maximumf %12, %13 : vector<8x128xf32>
    %15 = arith.truncf %14 : vector<8x128xf32> to vector<8x128xbf16>
    %c0_11 = arith.constant 0 : index
    %c0_12 = arith.constant 0 : index
    %16 = vector.load %arg5[%c0_11, %c0_12] : memref<128x128xbf16, #tpu.memory_space<vmem>>, vector<128x128xbf16>
    %cst_13 = arith.constant dense<0.000000e+00> : vector<8x128xf32>
    %17 = tpu.matmul %15, %16, %cst_13 {dimension_numbers = #tpu.dot_dimension_numbers<[1], [0], [0], [1], [0, 0, 1, 1], [], []>} : vector<8x128xbf16>, vector<128x128xbf16>, vector<8x128xf32> -> vector<8x128xf32>
    %c0_14 = arith.constant 0 : index
    %c0_15 = arith.constant 0 : index
    %18 = vector.load %arg6[%c0_14, %c0_15] : memref<1x128xf32, #tpu.memory_space<vmem>>, vector<1x128xf32>
    %19 = vector.broadcast %18 : vector<1x128xf32> to vector<8x128xf32>
    %20 = arith.addf %17, %19 : vector<8x128xf32>
    %c0_16 = arith.constant 0 : index
    %c0_17 = arith.constant 0 : index
    %21 = vector.load %arg7[%c0_16, %c0_17] : memref<8x128xf32, #tpu.memory_space<vmem>>, vector<8x128xf32>
    tpu.vector_store %arg7[%c0_16, %c0_17], %20 {strides = array<i32>} : memref<8x128xf32, #tpu.memory_space<vmem>>, vector<8x128xf32>,
    return
  }
}

</mosaic_0001>

<bundles_post_ra>
// kernel: classify_news_head.1
= control target key start
LH: loop header
LB: loop body
LE: loop exit
PB: predicated region body
PF: predicated region fallthrough
CT: control target
= control target key end

     0   :  { %12 = vsyncpa [#allocation3], 0  ;;  %s6035_s0 = inlined_call_operand.vmem [shape: bf16[8,1024], index: 0, kind: input, shape index: {}]   ;;  %s6036_s1 = inlined_call_operand.hbm [shape: bf16[1024,1024], index: 1, kind: input, shape index: {}]   ;;  %s6037_s2 = inlined_call_operand.hbm [shape: f32[1,1024], index: 2, kind: input, shape index: {}]   ;;  %s6038_s3 = inlined_call_operand.hbm [shape: bf16[1024,128], index: 3, kind: input, shape index: {}]   ;;  %s6039_s4 = inlined_call_operand.hbm [shape: f32[1,128], index: 4, kind: input, shape index: {}]   ;;  %s6040_s5 = inlined_call_operand.hbm [shape: bf16[128,128], index: 5, kind: input, shape index: {}]   ;;  %s6041_s6 = inlined_call_operand.hbm [shape: f32[1,128], index: 6, kind: input, shape index: {}]   ;;  %s6042_s7 = inlined_call_operand.hbm [shape: f32[8,128], index: 7, kind: output, shape index: {}]  }
   0x1   :  { %13 = vsyncpa [#allocation6], 0 }
   0x2   :  { %14 = vsyncpa [#allocation9], 0 }
   0x3   :  { %15 = vsyncpa [#allocation12], 0 }
   0x4   :  { %16 = vsyncpa [#allocation4], 0  ;;  %s5773_s24 = smov [#allocation5]   ;;  %s5774_s26 = smov [#allocation8]  }
   0x5   :  { %s37_s25 = sshll.u32 %s5773_s24, 4  ;;  %s59_s27 = sshll.u32 %s5774_s26, 4  ;;  %s38_s25 = int_to_ptr.vmem [resolvable:$true] %s37_s25  ;;  %s60_s27 = int_to_ptr.vmem [resolvable:$true] %s59_s27 }
   0x6   :  { %s5609_s30 = scalar_lea.hbm %s6037_s2, 128 }
   0x7   :  { %p5610_p0 = scmp.ne.s32.totalorder %s6037_s2, %s5609_s30  ;;  %p5613_p1 = scmp.lt.u32.totalorder %s5609_s30, %s6037_s2 }
   0x9   :  { %p5615_p2 = pnand %p5613_p1, %p5610_p0 }
   0xb   :  { %5618 = shalt.err (!%p5615_p2)
}
   0xc   :  { %s5619_s12 = scalar_lea.vmem %s38_s25, 128  ;;  %p5624_p4 = scmp.lt.s32.totalorder %s38_s25, %s38_s25 }
   0xd   :  { %p5620_p3 = scmp.ne.s32.totalorder %s38_s25, %s5619_s12  ;;  %p5625_p5 = scmp.lt.s32.totalorder %s5619_s12, %s5619_s12 }
   0xf   :  { %p5626_p6 = por %p5625_p5, %p5624_p4 }
  0x11   :  { %p5627_p7 = pnand %p5626_p6, %p5620_p3 }
  0x13   :  { %5630 = shalt.err (!%p5627_p7)
}
  0x14   :  { %40 = dma.hbm_to_vmem [thread:$0]  %s6037_s2, 128, %s38_s25, [#allocation6]  }
  0x15   :  { %s5631_s17 = scalar_lea.hbm %s6039_s4, 16 }
  0x16   :  { %p5632_p8 = scmp.ne.s32.totalorder %s6039_s4, %s5631_s17  ;;  %p5635_p9 = scmp.lt.u32.totalorder %s5631_s17, %s6039_s4 }
  0x18   :  { %p5637_p10 = pnand %p5635_p9, %p5632_p8 }
  0x1a   :  { %5640 = shalt.err (!%p5637_p10)
}
  0x1b   :  { %s5641_s22 = scalar_lea.vmem %s60_s27, 16  ;;  %s5645_s23 = scalar_lea.vmem %s60_s27, 32 }
  0x1c   :  { %p5642_p11 = scmp.ne.s32.totalorder %s60_s27, %s5641_s22  ;;  %p5646_p12 = scmp.lt.s32.totalorder %s60_s27, %s60_s27 }
  0x1d   :  { %p5647_p13 = scmp.lt.s32.totalorder %s5645_s23, %s5641_s22 }
  0x1f   :  { %p5648_p0 = por %p5647_p13, %p5646_p12 }
  0x21   :  { %p5649_p1 = pnand %p5648_p0, %p5642_p11 }
  0x23   :  { %5652 = shalt.err (!%p5649_p1)
}
  0x24   :  { %62 = dma.hbm_to_vmem [thread:$0]  %s6039_s4, 16, %s60_s27, [#allocation9]  }
  0x25   :  { %s5775_s25 = smov [#allocation2]   ;;  %s5653_s30 = scalar_lea.hbm %s6036_s1, 65536 }
  0x26   :  { %s24_s26 = sshll.u32 %s5775_s25, 4  ;;  %p5654_p2 = scmp.ne.s32.totalorder %s6036_s1, %s5653_s30  ;;  %s25_s26 = int_to_ptr.vmem [resolvable:$true] %s24_s26 }
  0x27   :  { %p5657_p3 = scmp.lt.u32.totalorder %s5653_s30, %s6036_s1 }
  0x29   :  { %p5659_p4 = pnand %p5657_p3, %p5654_p2 }
  0x2b   :  { %5662 = shalt.err (!%p5659_p4)
}
  0x2c   :  { %s5663_s12 = scalar_lea.vmem %s25_s26, 65536  ;;  %p5668_p6 = scmp.lt.s32.totalorder %s25_s26, %s25_s26 }
  0x2d   :  { %p5664_p5 = scmp.ne.s32.totalorder %s25_s26, %s5663_s12  ;;  %p5669_p7 = scmp.lt.s32.totalorder %s5663_s12, %s5663_s12 }
  0x2f   :  { %p5670_p8 = por %p5669_p7, %p5668_p6 }
  0x31   :  { %p5671_p9 = pnand %p5670_p8, %p5664_p5 }
  0x33   :  { %5674 = shalt.err (!%p5671_p9)
}
  0x34   :  { %s5776_s4 = smov 512   ;;  %s5777_s27 = smov 32  }
  0x35   :  { %30 = dma.hbm_to_vmem [thread:$0]  %s6036_s1, 65536, %s25_s26, [#allocation3], %s5776_s4, %s5776_s4, %s5777_s27  }
  0x36   :  { %s5778_s15 = smov [#allocation7]   ;;  %s5675_s19 = scalar_lea.hbm %s6038_s3, 8192 }
  0x37   :  { %s46_s16 = sshll.u32 %s5778_s15, 4  ;;  %p5676_p10 = scmp.ne.s32.totalorder %s6038_s3, %s5675_s19  ;;  %s47_s16 = int_to_ptr.vmem [resolvable:$true] %s46_s16 }
  0x38   :  { %p5679_p11 = scmp.lt.u32.totalorder %s5675_s19, %s6038_s3 }
  0x3a   :  { %p5681_p12 = pnand %p5679_p11, %p5676_p10 }
  0x3c   :  { %5684 = shalt.err (!%p5681_p12)
}
  0x3d   :  { %s5685_s2 = scalar_lea.vmem %s47_s16, 8192  ;;  %p5690_p0 = scmp.lt.s32.totalorder %s47_s16, %s47_s16 }
  0x3e   :  { %p5686_p13 = scmp.ne.s32.totalorder %s47_s16, %s5685_s2  ;;  %p5691_p1 = scmp.lt.s32.totalorder %s5685_s2, %s5685_s2 }
  0x40   :  { %p5692_p2 = por %p5691_p1, %p5690_p0 }
  0x42   :  { %p5693_p3 = pnand %p5692_p2, %p5686_p13 }
  0x44   :  { %5696 = shalt.err (!%p5693_p3)
}
  0x45   :  { %s5779_s1 = smov 64   ;;  %s5780_s24 = smov 4  }
  0x46   :  { %52 = dma.hbm_to_vmem [thread:$0]  %s6038_s3, 8192, %s47_s16, [#allocation6], %s5779_s1, %s5779_s1, %s5780_s24  }
  0x47   :  { %s5781_s28 = smov [#allocation10]   ;;  %s5782_s30 = smov [#allocation11]  }
  0x48   :  { %s68_s29 = sshll.u32 %s5781_s28, 4  ;;  %s81_s8 = sshll.u32 %s5782_s30, 4  ;;  %s69_s29 = int_to_ptr.vmem [resolvable:$true] %s68_s29  ;;  %s82_s8 = int_to_ptr.vmem [resolvable:$true] %s81_s8 }
  0x49   :  { %s5697_s11 = scalar_lea.hbm %s6040_s5, 1024 }
  0x4a   :  { %p5698_p4 = scmp.ne.s32.totalorder %s6040_s5, %s5697_s11  ;;  %p5701_p5 = scmp.lt.u32.totalorder %s5697_s11, %s6040_s5 }
  0x4c   :  { %p5703_p6 = pnand %p5701_p5, %p5698_p4 }
  0x4e   :  { %5706 = shalt.err (!%p5703_p6)
}
  0x4f   :  { %s5707_s3 = scalar_lea.vmem %s69_s29, 1024  ;;  %p5712_p8 = scmp.lt.s32.totalorder %s69_s29, %s69_s29 }
  0x50   :  { %p5708_p7 = scmp.ne.s32.totalorder %s69_s29, %s5707_s3  ;;  %p5713_p9 = scmp.lt.s32.totalorder %s5707_s3, %s5707_s3 }
  0x52   :  { %p5714_p10 = por %p5713_p9, %p5712_p8 }
  0x54   :  { %p5715_p11 = pnand %p5714_p10, %p5708_p7 }
  0x56   :  { %5718 = shalt.err (!%p5715_p11)
}
  0x57   :  { %74 = dma.hbm_to_vmem [thread:$0]  %s6040_s5, 1024, %s69_s29, [#allocation9], %s5779_s1, %s5779_s1, %s5780_s24  }
  0x58   :  { %s5719_s18 = scalar_lea.hbm %s6041_s6, 16 }
  0x59   :  { %p5720_p12 = scmp.ne.s32.totalorder %s6041_s6, %s5719_s18  ;;  %p5723_p13 = scmp.lt.u32.totalorder %s5719_s18, %s6041_s6 }
  0x5b   :  { %p5725_p0 = pnand %p5723_p13, %p5720_p12 }
  0x5d   :  { %5728 = shalt.err (!%p5725_p0)
}
  0x5e   :  { %s5729_s23 = scalar_lea.vmem %s82_s8, 16  ;;  %s5733_s2 = scalar_lea.vmem %s82_s8, 32 }
  0x5f   :  { %p5730_p1 = scmp.ne.s32.totalorder %s82_s8, %s5729_s23  ;;  %p5734_p2 = scmp.lt.s32.totalorder %s82_s8, %s82_s8 }
  0x60   :  { %p5735_p3 = scmp.lt.s32.totalorder %s5733_s2, %s5729_s23 }
  0x62   :  { %p5736_p4 = por %p5735_p3, %p5734_p2 }
  0x64   :  { %p5737_p5 = pnand %p5736_p4, %p5730_p1 }
  0x66   :  { %5740 = shalt.err (!%p5737_p5)
}
  0x67   :  { %84 = dma.hbm_to_vmem [thread:$0]  %s6041_s6, 16, %s82_s8, [#allocation12]  }
  0x68   :  { %5763 = dma.done.wait [#allocation3], 65536  }
  0x69   :  { %5764 = vsyncadd [#allocation3], 4294901760 }
  0x6a   :  { %5765 = dma.done.wait [#allocation6], 8320  }
  0x6b   :  { %5766 = vsyncadd [#allocation6], 4294958976 }
  0x6c   :  { %5767 = dma.done.wait [#allocation9], 1040  }
  0x6d   :  { %5768 = vsyncadd [#allocation9], 4294966256 }
  0x6e   :  { %5769 = dma.done.wait [#allocation12], 16  }
  0x6f   :  { %5770 = vsyncadd [#allocation12], 4294967280  ;;  %v108_v0 = vld [vmem:[#allocation2] sm:$0xff]  ;;  %v109_v2 = vld [vmem:[#allocation2 + $0x8] sm:$0xff]  ;;  %vm5784_vm0 = vmmov 0  }
  0x70   :  { %v112_v1 = vld [vmem:[#allocation2 + $0x20] sm:$0xff]  ;;  %v113_v4 = vld [vmem:[#allocation2 + $0x28] sm:$0xff] }
  0x71   :  { %v4742_v3 = vcombine.high %v108_v0, %v112_v1  ;;  %v4741_v5 = vcombine.low %v108_v0, %v112_v1  ;;  %v116_v6 = vld [vmem:[#allocation2 + $0x40] sm:$0xff]  ;;  %v4744_v8 = vcombine.high %v109_v2, %v113_v4  ;;  %v4743_v9 = vcombine.low %v109_v2, %v113_v4  ;;  %v117_v11 = vld [vmem:[#allocation2 + $0x48] sm:$0xff] }
  0x72   :  { %v120_v7 = vld [vmem:[#allocation2 + $0x60] sm:$0xff]  ;;  %v121_v12 = vld [vmem:[#allocation2 + $0x68] sm:$0xff] }
  0x73   :  { %v4750_v10 = vcombine.high %v116_v6, %v120_v7  ;;  %v124_v13 = vld [vmem:[#allocation2 + $0x80] sm:$0xff]  ;;  %3250 = vmatprep.subr.bf16.mxu0 %v4742_v3  ;;  %v4752_v14 = vcombine.high %v117_v11, %v121_v12  ;;  %v125_v16 = vld [vmem:[#allocation2 + $0x88] sm:$0xff]  ;;  %3414 = vmatprep.subr.bf16.mxu1 %v4744_v8  ;;  %v4749_v18 = vcombine.low %v116_v6, %v120_v7 }
  0x74   :  { %v128_v15 = vld [vmem:[#allocation2 + $0xa0] sm:$0xff]  ;;  %v129_v17 = vld [vmem:[#allocation2 + $0xa8] sm:$0xff]  ;;  %3251 = vmatpush1.bf16.msra.mxu0 %v4741_v5  ;;  %3415 = vmatpush1.bf16.msra.mxu1 %v4743_v9  ;;  %v4751_v19 = vcombine.low %v117_v11, %v121_v12 }
  0x75   :  { %3252 = vmatprep.subr.bf16.mxu0 %v4750_v10  ;;  %v4758_v20 = vcombine.high %v124_v13, %v128_v15  ;;  %3416 = vmatprep.subr.bf16.mxu1 %v4752_v14  ;;  %v4760_v21 = vcombine.high %v125_v16, %v129_v17  ;;  %v132_v22 = vld [vmem:[#allocation2 + $0xc0] sm:$0xff]  ;;  %v133_v24 = vld [vmem:[#allocation2 + $0xc8] sm:$0xff]  ;;  %v4757_v26 = vcombine.low %v124_v13, %v128_v15 }
  0x76   :  { %v136_v23 = vld [vmem:[#allocation2 + $0xe0] sm:$0xff]  ;;  %v137_v25 = vld [vmem:[#allocation2 + $0xe8] sm:$0xff]  ;;  %v4759_v27 = vcombine.low %v125_v16, %v129_v17 }
  0x77   :  { %v4766_v28 = vcombine.high %v132_v22, %v136_v23  ;;  %v4768_v29 = vcombine.high %v133_v24, %v137_v25  ;;  %v140_v30 = vld [vmem:[#allocation2 + $0x100] sm:$0xff]  ;;  %v141_v32 = vld [vmem:[#allocation2 + $0x108] sm:$0xff]  ;;  %v4765_v34 = vcombine.low %v132_v22, %v136_v23  ;;  %v4767_v35 = vcombine.low %v133_v24, %v137_v25 }
  0x78   :  { %3253 = vmatpush1.bf16.msra.mxu0 %v4749_v18  ;;  %3417 = vmatpush1.bf16.msra.mxu1 %v4751_v19  ;;  %v144_v31 = vld [vmem:[#allocation2 + $0x120] sm:$0xff]  ;;  %v145_v33 = vld [vmem:[#allocation2 + $0x128] sm:$0xff] }
  0x79   :  { %3254 = vmatprep.subr.bf16.mxu0 %v4758_v20  ;;  %3418 = vmatprep.subr.bf16.mxu1 %v4760_v21  ;;  %v4774_v36 = vcombine.high %v140_v30, %v144_v31  ;;  %v4776_v37 = vcombine.high %v141_v32, %v145_v33  ;;  %v148_v38 = vld [vmem:[#allocation2 + $0x140] sm:$0xff]  ;;  %v149_v40 = vld [vmem:[#allocation2 + $0x148] sm:$0xff]  ;;  %v4773_v42 = vcombine.low %v140_v30, %v144_v31 }
  0x7a   :  { %v152_v39 = vld [vmem:[#allocation2 + $0x160] sm:$0xff]  ;;  %v153_v41 = vld [vmem:[#allocation2 + $0x168] sm:$0xff]  ;;  %v4775_v43 = vcombine.low %v141_v32, %v145_v33 }
  0x7b   :  { %v4782_v44 = vcombine.high %v148_v38, %v152_v39  ;;  %v4784_v45 = vcombine.high %v149_v40, %v153_v41  ;;  %v156_v46 = vld [vmem:[#allocation2 + $0x180] sm:$0xff]  ;;  %v157_v48 = vld [vmem:[#allocation2 + $0x188] sm:$0xff]  ;;  %v4781_v50 = vcombine.low %v148_v38, %v152_v39  ;;  %v4783_v51 = vcombine.low %v149_v40, %v153_v41 }
  0x7c   :  { %3255 = vmatpush1.bf16.msra.mxu0 %v4757_v26  ;;  %3419 = vmatpush1.bf16.msra.mxu1 %v4759_v27  ;;  %v160_v47 = vld [vmem:[#allocation2 + $0x1a0] sm:$0xff]  ;;  %v161_v49 = vld [vmem:[#allocation2 + $0x1a8] sm:$0xff] }
  0x7d   :  { %3256 = vmatprep.subr.bf16.mxu0 %v4766_v28  ;;  %3420 = vmatprep.subr.bf16.mxu1 %v4768_v29  ;;  %v4790_v52 = vcombine.high %v156_v46, %v160_v47  ;;  %v5901_v53 = vld [vmem:[%s6035_s0] sm:$0xff]  ;;  %v4792_v54 = vcombine.high %v157_v48, %v161_v49  ;;  %v165_v58 = vld [vmem:[#allocation2 + $0x1c8] sm:$0xff]  ;;  %v4789_v60 = vcombine.low %v156_v46, %v160_v47 }
  0x7e   :  { %v164_v55 = vld [vmem:[#allocation2 + $0x1c0] sm:$0xff]  ;;  %v5905_v57 = vcombine.high %v5901_v53, %v5901_v53  ;;  %v169_v59 = vld [vmem:[#allocation2 + $0x1e8] sm:$0xff]  ;;  %v4791_v61 = vcombine.low %v157_v48, %v161_v49 }
  0x7f   :  { %v168_v56 = vld [vmem:[#allocation2 + $0x1e0] sm:$0xff]  ;;  %v4800_v63 = vcombine.high %v165_v58, %v169_v59  ;;  %v173_v2 = vld [vmem:[#allocation2 + $0x208] sm:$0xff]  ;;  %v4799_v5 = vcombine.low %v165_v58, %v169_v59 }
  0x80   :  { %3257 = vmatpush1.bf16.msra.mxu0 %v4765_v34  ;;  %3421 = vmatpush1.bf16.msra.mxu1 %v4767_v35  ;;  %v4798_v62 = vcombine.high %v164_v55, %v168_v56  ;;  %v172_v0 = vld [vmem:[#allocation2 + $0x200] sm:$0xff]  ;;  %v177_v3 = vld [vmem:[#allocation2 + $0x228] sm:$0xff]  ;;  %v4797_v4 = vcombine.low %v164_v55, %v168_v56 }
  0x81   :  { %3258 = vmatprep.subr.bf16.mxu0 %v4774_v36  ;;  %3422 = vmatprep.subr.bf16.mxu1 %v4776_v37  ;;  %v176_v1 = vld [vmem:[#allocation2 + $0x220] sm:$0xff]  ;;  %v4808_v7 = vcombine.high %v173_v2, %v177_v3  ;;  %v181_v10 = vld [vmem:[#allocation2 + $0x248] sm:$0xff]  ;;  %v4807_v13 = vcombine.low %v173_v2, %v177_v3 }
  0x82   :  { %3282 = vmatprep.mubr.bf16.mxu0 %v5905_v57  ;;  %3446 = vmatprep.mubr.bf16.mxu1 %v5905_v57  ;;  %v4806_v6 = vcombine.high %v172_v0, %v176_v1  ;;  %v180_v8 = vld [vmem:[#allocation2 + $0x240] sm:$0xff]  ;;  %v185_v11 = vld [vmem:[#allocation2 + $0x268] sm:$0xff]  ;;  %v4805_v12 = vcombine.low %v172_v0, %v176_v1 }
  0x83   :  { %v184_v9 = vld [vmem:[#allocation2 + $0x260] sm:$0xff]  ;;  %v4816_v15 = vcombine.high %v181_v10, %v185_v11  ;;  %v189_v18 = vld [vmem:[#allocation2 + $0x288] sm:$0xff]  ;;  %v4815_v21 = vcombine.low %v181_v10, %v185_v11 }
  0x84   :  { %3259 = vmatpush1.bf16.msra.mxu0 %v4773_v42  ;;  %3423 = vmatpush1.bf16.msra.mxu1 %v4775_v43  ;;  %v4814_v14 = vcombine.high %v180_v8, %v184_v9  ;;  %v188_v16 = vld [vmem:[#allocation2 + $0x280] sm:$0xff]  ;;  %v193_v19 = vld [vmem:[#allocation2 + $0x2a8] sm:$0xff]  ;;  %v4813_v20 = vcombine.low %v180_v8, %v184_v9 }
  0x85   :  { %3260 = vmatprep.subr.bf16.mxu0 %v4782_v44  ;;  %3424 = vmatprep.subr.bf16.mxu1 %v4784_v45  ;;  %v192_v17 = vld [vmem:[#allocation2 + $0x2a0] sm:$0xff]  ;;  %v4824_v23 = vcombine.high %v189_v18, %v193_v19  ;;  %v197_v26 = vld [vmem:[#allocation2 + $0x2c8] sm:$0xff]  ;;  %v4823_v29 = vcombine.low %v189_v18, %v193_v19 }
  0x86   :  { %v4822_v22 = vcombine.high %v188_v16, %v192_v17  ;;  %v196_v24 = vld [vmem:[#allocation2 + $0x2c0] sm:$0xff]  ;;  %v201_v27 = vld [vmem:[#allocation2 + $0x2e8] sm:$0xff]  ;;  %v4821_v28 = vcombine.low %v188_v16, %v192_v17 }
  0x87   :  { %v200_v25 = vld [vmem:[#allocation2 + $0x2e0] sm:$0xff]  ;;  %v4832_v31 = vcombine.high %v197_v26, %v201_v27  ;;  %v205_v34 = vld [vmem:[#allocation2 + $0x308] sm:$0xff]  ;;  %v4831_v37 = vcombine.low %v197_v26, %v201_v27 }
  0x88   :  { %3261 = vmatpush1.bf16.msra.mxu0 %v4781_v50  ;;  %3425 = vmatpush1.bf16.msra.mxu1 %v4783_v51  ;;  %v4830_v30 = vcombine.high %v196_v24, %v200_v25  ;;  %v204_v32 = vld [vmem:[#allocation2 + $0x300] sm:$0xff]  ;;  %v209_v35 = vld [vmem:[#allocation2 + $0x328] sm:$0xff]  ;;  %v4829_v36 = vcombine.low %v196_v24, %v200_v25 }
  0x89   :  { %3262 = vmatprep.subr.bf16.mxu0 %v4790_v52  ;;  %3426 = vmatprep.subr.bf16.mxu1 %v4792_v54  ;;  %v208_v33 = vld [vmem:[#allocation2 + $0x320] sm:$0xff]  ;;  %v4840_v39 = vcombine.high %v205_v34, %v209_v35  ;;  %v213_v42 = vld [vmem:[#allocation2 + $0x348] sm:$0xff]  ;;  %v4839_v45 = vcombine.low %v205_v34, %v209_v35 }
  0x8a   :  { %v4838_v38 = vcombine.high %v204_v32, %v208_v33  ;;  %v212_v40 = vld [vmem:[#allocation2 + $0x340] sm:$0xff]  ;;  %v217_v43 = vld [vmem:[#allocation2 + $0x368] sm:$0xff]  ;;  %v4837_v44 = vcombine.low %v204_v32, %v208_v33 }
  0x8b   :  { %v216_v41 = vld [vmem:[#allocation2 + $0x360] sm:$0xff]  ;;  %v4848_v47 = vcombine.high %v213_v42, %v217_v43  ;;  %v221_v50 = vld [vmem:[#allocation2 + $0x388] sm:$0xff]  ;;  %v4847_v54 = vcombine.low %v213_v42, %v217_v43 }
  0x8c   :  { %3263 = vmatpush1.bf16.msra.mxu0 %v4789_v60  ;;  %3427 = vmatpush1.bf16.msra.mxu1 %v4791_v61  ;;  %v4846_v46 = vcombine.high %v212_v40, %v216_v41  ;;  %v220_v48 = vld [vmem:[#allocation2 + $0x380] sm:$0xff]  ;;  %v225_v51 = vld [vmem:[#allocation2 + $0x3a8] sm:$0xff]  ;;  %v4845_v52 = vcombine.low %v212_v40, %v216_v41 }
  0x8d   :  { %3264 = vmatprep.subr.bf16.mxu0 %v4798_v62  ;;  %3428 = vmatprep.subr.bf16.mxu1 %v4800_v63  ;;  %v224_v49 = vld [vmem:[#allocation2 + $0x3a0] sm:$0xff]  ;;  %v4856_v56 = vcombine.high %v221_v50, %v225_v51  ;;  %v229_v60 = vld [vmem:[#allocation2 + $0x3c8] sm:$0xff]  ;;  %v4855_v63 = vcombine.low %v221_v50, %v225_v51 }
  0x8e   :  { %v4854_v55 = vcombine.high %v220_v48, %v224_v49  ;;  %v228_v58 = vld [vmem:[#allocation2 + $0x3c0] sm:$0xff]  ;;  %v233_v61 = vld [vmem:[#allocation2 + $0x3e8] sm:$0xff]  ;;  %v4853_v62 = vcombine.low %v220_v48, %v224_v49 }
  0x8f   :  { %v232_v59 = vld [vmem:[#allocation2 + $0x3e0] sm:$0xff]  ;;  %v4864_v1 = vcombine.high %v229_v60, %v233_v61 }
  0x90   :  { %3265 = vmatpush1.bf16.msra.mxu0 %v4797_v4  ;;  %3429 = vmatpush1.bf16.msra.mxu1 %v4799_v5  ;;  %v4862_v0 = vcombine.high %v228_v58, %v232_v59  ;;  %v236_v2 = vld [vmem:[#allocation2 + $0x400] sm:$0xff]  ;;  %v237_v4 = vld [vmem:[#allocation2 + $0x408] sm:$0xff] }
  0x91   :  { %3266 = vmatprep.subr.bf16.mxu0 %v4806_v6  ;;  %3430 = vmatprep.subr.bf16.mxu1 %v4808_v7  ;;  %v240_v3 = vld [vmem:[#allocation2 + $0x420] sm:$0xff]  ;;  %v241_v5 = vld [vmem:[#allocation2 + $0x428] sm:$0xff]  ;;  %v4861_v6 = vcombine.low %v228_v58, %v232_v59  ;;  %v4863_v7 = vcombine.low %v229_v60, %v233_v61 }
  0x92   :  { %v4870_v8 = vcombine.high %v236_v2, %v240_v3  ;;  %v4872_v9 = vcombine.high %v237_v4, %v241_v5  ;;  %v244_v10 = vld [vmem:[#allocation2 + $0x440] sm:$0xff]  ;;  %v4869_v16 = vcombine.low %v236_v2, %v240_v3  ;;  %v4871_v17 = vcombine.low %v237_v4, %v241_v5 }
  0x93   :  { %v248_v11 = vld [vmem:[#allocation2 + $0x460] sm:$0xff] }
  0x94   :  { %3267 = vmatpush1.bf16.msra.mxu0 %v4805_v12  ;;  %3431 = vmatpush1.bf16.msra.mxu1 %v4807_v13  ;;  %v5911_v12 = vcombine.low %v5901_v53, %v5901_v53  ;;  %v245_v13 = vld [vmem:[#allocation2 + $0x448] sm:$0xff]  ;;  %v4878_v18 = vcombine.high %v244_v10, %v248_v11  ;;  %v252_v19 = vld [vmem:[#allocation2 + $0x480] sm:$0xff]  ;;  %v4877_v24 = vcombine.low %v244_v10, %v248_v11 }
  0x95   :  { %3268 = vmatprep.subr.bf16.mxu0 %v4814_v14  ;;  %3432 = vmatprep.subr.bf16.mxu1 %v4816_v15  ;;  %v249_v14 = vld [vmem:[#allocation2 + $0x468] sm:$0xff]  ;;  %v260_v27 = vld [vmem:[#allocation2 + $0x4c0] sm:$0xff] }
  0x96   :  { %v5916_v15 = vld [vmem:[%s6035_s0 + $0x8] sm:$0xff]  ;;  %v4879_v25 = vcombine.low %v245_v13, %v249_v14  ;;  %v268_v35 = vld [vmem:[#allocation2 + $0x500] sm:$0xff] }
  0x97   :  { %v257_v53 = vld [vmem:[#allocation2 + $0x4a8] sm:$0xff]  ;;  %v276_v43 = vld [vmem:[#allocation2 + $0x540] sm:$0xff] }
  0x98   :  { %3269 = vmatpush1.bf16.msra.mxu0 %v4813_v20  ;;  %3433 = vmatpush1.bf16.msra.mxu1 %v4815_v21  ;;  %v256_v20 = vld [vmem:[#allocation2 + $0x4a0] sm:$0xff]  ;;  %v4880_v21 = vcombine.high %v245_v13, %v249_v14 }
  0x99   :  { %3270 = vmatprep.subr.bf16.mxu0 %v4822_v22  ;;  %3434 = vmatprep.subr.bf16.mxu1 %v4824_v23  ;;  %v253_v22 = vld [vmem:[#allocation2 + $0x488] sm:$0xff]  ;;  %v5920_v23 = vcombine.high %v5916_v15, %v5916_v15  ;;  %v4886_v26 = vcombine.high %v252_v19, %v256_v20  ;;  %v4885_v32 = vcombine.low %v252_v19, %v256_v20  ;;  %v284_v51 = vld [vmem:[#allocation2 + $0x580] sm:$0xff] }
  0x9a   :  { %v4887_v33 = vcombine.low %v253_v22, %v257_v53  ;;  %v292_v61 = vld [vmem:[#allocation2 + $0x5c0] sm:$0xff]  ;;  %v313_v19 = vld [vmem:[#allocation2 + $0x668] sm:$0xff] }
  0x9b   :  { %v300_v5 = vld [vmem:[#allocation2 + $0x600] sm:$0xff] }
  0x9c   :  { %3271 = vmatpush1.bf16.msra.mxu0 %v4821_v28  ;;  %3435 = vmatpush1.bf16.msra.mxu1 %v4823_v29  ;;  %v264_v28 = vld [vmem:[#allocation2 + $0x4e0] sm:$0xff]  ;;  %v261_v29 = vld [vmem:[#allocation2 + $0x4c8] sm:$0xff] }
  0x9d   :  { %3272 = vmatprep.subr.bf16.mxu0 %v4830_v30  ;;  %3436 = vmatprep.subr.bf16.mxu1 %v4832_v31  ;;  %v4888_v30 = vcombine.high %v253_v22, %v257_v53  ;;  %v265_v31 = vld [vmem:[#allocation2 + $0x4e8] sm:$0xff]  ;;  %v4894_v34 = vcombine.high %v260_v27, %v264_v28  ;;  %v4893_v40 = vcombine.low %v260_v27, %v264_v28  ;;  %v308_v14 = vld [vmem:[#allocation2 + $0x640] sm:$0xff] }
  0x9e   :  { %v4895_v41 = vcombine.low %v261_v29, %v265_v31  ;;  %v316_v53 = vld [vmem:[#allocation2 + $0x680] sm:$0xff]  ;;  %v321_v27 = vld [vmem:[#allocation2 + $0x6a8] sm:$0xff] }
  0xa0   :  { %3273 = vmatpush1.bf16.msra.mxu0 %v4829_v36  ;;  %3437 = vmatpush1.bf16.msra.mxu1 %v4831_v37  ;;  %v272_v36 = vld [vmem:[#allocation2 + $0x520] sm:$0xff]  ;;  %v269_v37 = vld [vmem:[#allocation2 + $0x508] sm:$0xff] }
  0xa1   :  { %3274 = vmatprep.subr.bf16.mxu0 %v4838_v38  ;;  %3438 = vmatprep.subr.bf16.mxu1 %v4840_v39  ;;  %v4896_v38 = vcombine.high %v261_v29, %v265_v31  ;;  %v273_v39 = vld [vmem:[#allocation2 + $0x528] sm:$0xff]  ;;  %v4902_v42 = vcombine.high %v268_v35, %v272_v36  ;;  %v4901_v48 = vcombine.low %v268_v35, %v272_v36  ;;  %v324_v31 = vld [vmem:[#allocation2 + $0x6c0] sm:$0xff] }
  0xa2   :  { %v4903_v49 = vcombine.low %v269_v37, %v273_v39  ;;  %v329_v35 = vld [vmem:[#allocation2 + $0x6e8] sm:$0xff] }
  0xa4   :  { %3275 = vmatpush1.bf16.msra.mxu0 %v4837_v44  ;;  %3439 = vmatpush1.bf16.msra.mxu1 %v4839_v45  ;;  %v280_v44 = vld [vmem:[#allocation2 + $0x560] sm:$0xff]  ;;  %v277_v45 = vld [vmem:[#allocation2 + $0x548] sm:$0xff] }
  0xa5   :  { %3276 = vmatprep.subr.bf16.mxu0 %v4846_v46  ;;  %3440 = vmatprep.subr.bf16.mxu1 %v4848_v47  ;;  %v4904_v46 = vcombine.high %v269_v37, %v273_v39  ;;  %v281_v47 = vld [vmem:[#allocation2 + $0x568] sm:$0xff]  ;;  %v4910_v50 = vcombine.high %v276_v43, %v280_v44  ;;  %v4909_v58 = vcombine.low %v276_v43, %v280_v44  ;;  %v332_v39 = vld [vmem:[#allocation2 + $0x700] sm:$0xff] }
  0xa6   :  { %v4911_v59 = vcombine.low %v277_v45, %v281_v47  ;;  %v337_v43 = vld [vmem:[#allocation2 + $0x728] sm:$0xff] }
  0xa8   :  { %3277 = vmatpush1.bf16.msra.mxu0 %v4845_v52  ;;  %3441 = vmatpush1.bf16.msra.mxu1 %v4847_v54  ;;  %v288_v52 = vld [vmem:[#allocation2 + $0x5a0] sm:$0xff]  ;;  %v285_v54 = vld [vmem:[#allocation2 + $0x588] sm:$0xff] }
  0xa9   :  { %3278 = vmatprep.subr.bf16.mxu0 %v4854_v55  ;;  %3442 = vmatprep.subr.bf16.mxu1 %v4856_v56  ;;  %v4912_v55 = vcombine.high %v277_v45, %v281_v47  ;;  %v289_v56 = vld [vmem:[#allocation2 + $0x5a8] sm:$0xff]  ;;  %v4918_v60 = vcombine.high %v284_v51, %v288_v52  ;;  %v4917_v2 = vcombine.low %v284_v51, %v288_v52  ;;  %v340_v47 = vld [vmem:[#allocation2 + $0x740] sm:$0xff] }
  0xaa   :  { %v4919_v3 = vcombine.low %v285_v54, %v289_v56  ;;  %v345_v51 = vld [vmem:[#allocation2 + $0x768] sm:$0xff] }
  0xac   :  { %3279 = vmatpush1.bf16.msra.mxu0 %v4853_v62  ;;  %3443 = vmatpush1.bf16.msra.mxu1 %v4855_v63  ;;  %v296_v62 = vld [vmem:[#allocation2 + $0x5e0] sm:$0xff]  ;;  %v293_v63 = vld [vmem:[#allocation2 + $0x5c8] sm:$0xff] }
  0xad   :  { %3280 = vmatprep.subr.bf16.mxu0 %v4862_v0  ;;  %3444 = vmatprep.subr.bf16.mxu1 %v4864_v1  ;;  %v4920_v0 = vcombine.high %v285_v54, %v289_v56  ;;  %v297_v1 = vld [vmem:[#allocation2 + $0x5e8] sm:$0xff]  ;;  %v4926_v4 = vcombine.high %v292_v61, %v296_v62  ;;  %v4925_v10 = vcombine.low %v292_v61, %v296_v62  ;;  %v348_v56 = vld [vmem:[#allocation2 + $0x780] sm:$0xff] }
  0xae   :  { %v4927_v11 = vcombine.low %v293_v63, %v297_v1  ;;  %v353_v61 = vld [vmem:[#allocation2 + $0x7a8] sm:$0xff] }
  0xb0   :  { %3281 = vmatpush1.bf16.msra.mxu0 %v4861_v6  ;;  %3445 = vmatpush1.bf16.msra.mxu1 %v4863_v7  ;;  %v304_v6 = vld [vmem:[#allocation2 + $0x620] sm:$0xff]  ;;  %v301_v7 = vld [vmem:[#allocation2 + $0x608] sm:$0xff] }
  0xb1   :  { %3291 = vmatprep.subr.bf16.mxu0 %v4870_v8  ;;  %3455 = vmatprep.subr.bf16.mxu1 %v4872_v9  ;;  %v4928_v8 = vcombine.high %v293_v63, %v297_v1  ;;  %v305_v9 = vld [vmem:[#allocation2 + $0x628] sm:$0xff]  ;;  %v4934_v13 = vcombine.high %v300_v5, %v304_v6  ;;  %v4933_v20 = vcombine.low %v300_v5, %v304_v6  ;;  %v356_v1 = vld [vmem:[#allocation2 + $0x7c0] sm:$0xff] }
  0xb2   :  { %v361_v5 = vld [vmem:[#allocation2 + $0x7e8] sm:$0xff] }
  0xb3   :  { %3283 = vmatmul.mubr.bf16.vlgmr.msra.gmra.mrb[0].mxu0 %v5911_v12  ;;  %3447 = vmatmul.mubr.bf16.vlgmr.msra.gmra.mrb[0].mxu1 %v5911_v12 }
  0xb4   :  { %3292 = vmatpush1.bf16.msra.mxu0 %v4869_v16  ;;  %3456 = vmatpush1.bf16.msra.mxu1 %v4871_v17  ;;  %v312_v16 = vld [vmem:[#allocation2 + $0x660] sm:$0xff]  ;;  %v309_v17 = vld [vmem:[#allocation2 + $0x648] sm:$0xff] }
  0xb5   :  { %3293 = vmatprep.subr.bf16.mxu0 %v4878_v18  ;;  %3457 = vmatprep.subr.bf16.mxu1 %v4880_v21  ;;  %v4936_v18 = vcombine.high %v301_v7, %v305_v9  ;;  %v4935_v21 = vcombine.low %v301_v7, %v305_v9  ;;  %v4942_v22 = vcombine.high %v308_v14, %v312_v16  ;;  %v364_v9 = vld [vmem:[#allocation2 + $0x800] sm:$0xff] }
  0xb6   :  { %3323 = vmatprep.mubr.bf16.mxu0 %v5920_v23  ;;  %3487 = vmatprep.mubr.bf16.mxu1 %v5920_v23  ;;  %v4941_v28 = vcombine.low %v308_v14, %v312_v16  ;;  %v4943_v29 = vcombine.low %v309_v17, %v313_v19  ;;  %v369_v14 = vld [vmem:[#allocation2 + $0x828] sm:$0xff] }
  0xb8   :  { %3294 = vmatpush1.bf16.msra.mxu0 %v4877_v24  ;;  %3458 = vmatpush1.bf16.msra.mxu1 %v4879_v25  ;;  %v320_v24 = vld [vmem:[#allocation2 + $0x6a0] sm:$0xff]  ;;  %v317_v25 = vld [vmem:[#allocation2 + $0x688] sm:$0xff] }
  0xb9   :  { %3295 = vmatprep.subr.bf16.mxu0 %v4886_v26  ;;  %3459 = vmatprep.subr.bf16.mxu1 %v4888_v30  ;;  %v4944_v26 = vcombine.high %v309_v17, %v313_v19  ;;  %v4950_v30 = vcombine.high %v316_v53, %v320_v24  ;;  %v4949_v36 = vcombine.low %v316_v53, %v320_v24  ;;  %v372_v17 = vld [vmem:[#allocation2 + $0x840] sm:$0xff]  ;;  %v5929_v24 = vld [vmem:[%s6035_s0 + $0x10] sm:$0xff] }
  0xba   :  { %v4951_v37 = vcombine.low %v317_v25, %v321_v27 }
  0xbc   :  { %3296 = vmatpush1.bf16.msra.mxu0 %v4885_v32  ;;  %3460 = vmatpush1.bf16.msra.mxu1 %v4887_v33  ;;  %v328_v32 = vld [vmem:[#allocation2 + $0x6e0] sm:$0xff]  ;;  %v325_v33 = vld [vmem:[#allocation2 + $0x6c8] sm:$0xff] }
  0xbd   :  { %3297 = vmatprep.subr.bf16.mxu0 %v4894_v34  ;;  %3461 = vmatprep.subr.bf16.mxu1 %v4896_v38  ;;  %v4952_v34 = vcombine.high %v317_v25, %v321_v27  ;;  %v4958_v38 = vcombine.high %v324_v31, %v328_v32  ;;  %v4957_v44 = vcombine.low %v324_v31, %v328_v32  ;;  %v381_v31 = vld [vmem:[#allocation2 + $0x888] sm:$0xff] }
  0xbe   :  { %v4959_v45 = vcombine.low %v325_v33, %v329_v35  ;;  %v5933_v25 = vcombine.low %v5916_v15, %v5916_v15 }
  0xc0   :  { %3298 = vmatpush1.bf16.msra.mxu0 %v4893_v40  ;;  %3462 = vmatpush1.bf16.msra.mxu1 %v4895_v41  ;;  %v336_v40 = vld [vmem:[#allocation2 + $0x720] sm:$0xff]  ;;  %v333_v41 = vld [vmem:[#allocation2 + $0x708] sm:$0xff] }
  0xc1   :  { %3299 = vmatprep.subr.bf16.mxu0 %v4902_v42  ;;  %3463 = vmatprep.subr.bf16.mxu1 %v4904_v46  ;;  %v4960_v42 = vcombine.high %v325_v33, %v329_v35  ;;  %v4966_v46 = vcombine.high %v332_v39, %v336_v40  ;;  %v4965_v52 = vcombine.low %v332_v39, %v336_v40  ;;  %v385_v33 = vld [vmem:[#allocation2 + $0x8a8] sm:$0xff] }
  0xc2   :  { %v4967_v54 = vcombine.low %v333_v41, %v337_v43  ;;  %v389_v39 = vld [vmem:[#allocation2 + $0x8c8] sm:$0xff]  ;;  %v5016_v40 = vcombine.high %v381_v31, %v385_v33 }
  0xc4   :  { %3300 = vmatpush1.bf16.msra.mxu0 %v4901_v48  ;;  %3464 = vmatpush1.bf16.msra.mxu1 %v4903_v49  ;;  %v344_v48 = vld [vmem:[#allocation2 + $0x760] sm:$0xff]  ;;  %v341_v49 = vld [vmem:[#allocation2 + $0x748] sm:$0xff] }
  0xc5   :  { %3301 = vmatprep.subr.bf16.mxu0 %v4910_v50  ;;  %3465 = vmatprep.subr.bf16.mxu1 %v4912_v55  ;;  %v4968_v50 = vcombine.high %v333_v41, %v337_v43  ;;  %v4974_v55 = vcombine.high %v340_v47, %v344_v48  ;;  %v4973_v62 = vcombine.low %v340_v47, %v344_v48  ;;  %v393_v41 = vld [vmem:[#allocation2 + $0x8e8] sm:$0xff]  ;;  %v400_v47 = vld [vmem:[#allocation2 + $0x920] sm:$0xff] }
  0xc6   :  { %v4975_v63 = vcombine.low %v341_v49, %v345_v51  ;;  %v5015_v43 = vcombine.low %v381_v31, %v385_v33  ;;  %v397_v48 = vld [vmem:[#allocation2 + $0x908] sm:$0xff] }
  0xc7   :  { %v441_v31 = vld [vmem:[#allocation2 + $0xa68] sm:$0xff] }
  0xc8   :  { %3302 = vmatpush1.bf16.msra.mxu0 %v4909_v58  ;;  %3466 = vmatpush1.bf16.msra.mxu1 %v4911_v59  ;;  %v352_v58 = vld [vmem:[#allocation2 + $0x7a0] sm:$0xff]  ;;  %v349_v59 = vld [vmem:[#allocation2 + $0x788] sm:$0xff] }
  0xc9   :  { %3303 = vmatprep.subr.bf16.mxu0 %v4918_v60  ;;  %3467 = vmatprep.subr.bf16.mxu1 %v4920_v0  ;;  %v4976_v60 = vcombine.high %v341_v49, %v345_v51  ;;  %v4982_v0 = vcombine.high %v348_v56, %v352_v58  ;;  %v4981_v6 = vcombine.low %v348_v56, %v352_v58  ;;  %v401_v49 = vld [vmem:[#allocation2 + $0x928] sm:$0xff]  ;;  %v408_v56 = vld [vmem:[#allocation2 + $0x960] sm:$0xff] }
  0xca   :  { %v4983_v7 = vcombine.low %v349_v59, %v353_v61  ;;  %v5023_v51 = vcombine.low %v389_v39, %v393_v41  ;;  %v405_v58 = vld [vmem:[#allocation2 + $0x948] sm:$0xff] }
  0xcc   :  { %3304 = vmatpush1.bf16.msra.mxu0 %v4917_v2  ;;  %3468 = vmatpush1.bf16.msra.mxu1 %v4919_v3  ;;  %v360_v2 = vld [vmem:[#allocation2 + $0x7e0] sm:$0xff]  ;;  %v357_v3 = vld [vmem:[#allocation2 + $0x7c8] sm:$0xff] }
  0xcd   :  { %3305 = vmatprep.subr.bf16.mxu0 %v4926_v4  ;;  %3469 = vmatprep.subr.bf16.mxu1 %v4928_v8  ;;  %v4984_v4 = vcombine.high %v349_v59, %v353_v61  ;;  %v4990_v8 = vcombine.high %v356_v1, %v360_v2  ;;  %v4989_v16 = vcombine.low %v356_v1, %v360_v2  ;;  %v409_v59 = vld [vmem:[#allocation2 + $0x968] sm:$0xff]  ;;  %v416_v1 = vld [vmem:[#allocation2 + $0x9a0] sm:$0xff] }
  0xce   :  { %v5031_v61 = vcombine.low %v397_v48, %v401_v49  ;;  %v413_v2 = vld [vmem:[#allocation2 + $0x988] sm:$0xff] }
  0xd0   :  { %3306 = vmatpush1.bf16.msra.mxu0 %v4925_v10  ;;  %3470 = vmatpush1.bf16.msra.mxu1 %v4927_v11  ;;  %v368_v10 = vld [vmem:[#allocation2 + $0x820] sm:$0xff]  ;;  %v365_v11 = vld [vmem:[#allocation2 + $0x808] sm:$0xff] }
  0xd1   :  { %3307 = vmatprep.subr.bf16.mxu0 %v4934_v13  ;;  %3471 = vmatprep.subr.bf16.mxu1 %v4936_v18  ;;  %v4992_v13 = vcombine.high %v357_v3, %v361_v5  ;;  %v4991_v18 = vcombine.low %v357_v3, %v361_v5  ;;  %v4998_v19 = vcombine.high %v364_v9, %v368_v10  ;;  %v417_v3 = vld [vmem:[#allocation2 + $0x9a8] sm:$0xff] }
  0xd2   :  { %v5000_v53 = vcombine.high %v365_v11, %v369_v14  ;;  %v4999_v27 = vcombine.low %v365_v11, %v369_v14  ;;  %v5039_v5 = vcombine.low %v405_v58, %v409_v59  ;;  %v425_v11 = vld [vmem:[#allocation2 + $0x9e8] sm:$0xff]  ;;  %v5047_v14 = vcombine.low %v413_v2, %v417_v3 }
  0xd4   :  { %3308 = vmatpush1.bf16.msra.mxu0 %v4933_v20  ;;  %3472 = vmatpush1.bf16.msra.mxu1 %v4935_v21  ;;  %v376_v20 = vld [vmem:[#allocation2 + $0x860] sm:$0xff]  ;;  %v373_v21 = vld [vmem:[#allocation2 + $0x848] sm:$0xff] }
  0xd5   :  { %3309 = vmatprep.subr.bf16.mxu0 %v4942_v22  ;;  %3473 = vmatprep.subr.bf16.mxu1 %v4944_v26  ;;  %v377_v22 = vld [vmem:[#allocation2 + $0x868] sm:$0xff]  ;;  %v4997_v26 = vcombine.low %v364_v9, %v368_v10  ;;  %v5005_v15 = vcombine.low %v372_v17, %v376_v20  ;;  %v424_v9 = vld [vmem:[#allocation2 + $0x9e0] sm:$0xff] }
  0xd6   :  { %v5008_v32 = vcombine.high %v373_v21, %v377_v22  ;;  %v5007_v35 = vcombine.low %v373_v21, %v377_v22  ;;  %v421_v10 = vld [vmem:[#allocation2 + $0x9c8] sm:$0xff] }
  0xd7   :  { %v433_v21 = vld [vmem:[#allocation2 + $0xa28] sm:$0xff] }
  0xd8   :  { %3310 = vmatpush1.bf16.msra.mxu0 %v4941_v28  ;;  %3474 = vmatpush1.bf16.msra.mxu1 %v4943_v29  ;;  %v5006_v28 = vcombine.high %v372_v17, %v376_v20  ;;  %v380_v29 = vld [vmem:[#allocation2 + $0x880] sm:$0xff]  ;;  %v5056_v17 = vcombine.high %v421_v10, %v425_v11  ;;  %v429_v20 = vld [vmem:[#allocation2 + $0xa08] sm:$0xff] }
  0xd9   :  { %3311 = vmatprep.subr.bf16.mxu0 %v4950_v30  ;;  %3475 = vmatprep.subr.bf16.mxu1 %v4952_v34  ;;  %v384_v30 = vld [vmem:[#allocation2 + $0x8a0] sm:$0xff]  ;;  %v5937_v34 = vcombine.high %v5929_v24, %v5929_v24  ;;  %v5063_v33 = vcombine.low %v429_v20, %v433_v21 }
  0xdc   :  { %3312 = vmatpush1.bf16.msra.mxu0 %v4949_v36  ;;  %3476 = vmatpush1.bf16.msra.mxu1 %v4951_v37  ;;  %v5014_v36 = vcombine.high %v380_v29, %v384_v30  ;;  %v388_v37 = vld [vmem:[#allocation2 + $0x8c0] sm:$0xff] }
  0xdd   :  { %3313 = vmatprep.subr.bf16.mxu0 %v4958_v38  ;;  %3477 = vmatprep.subr.bf16.mxu1 %v4960_v42  ;;  %v392_v38 = vld [vmem:[#allocation2 + $0x8e0] sm:$0xff]  ;;  %v5013_v42 = vcombine.low %v380_v29, %v384_v30  ;;  %v437_v30 = vld [vmem:[#allocation2 + $0xa48] sm:$0xff] }
  0xde   :  { %v440_v29 = vld [vmem:[#allocation2 + $0xa60] sm:$0xff] }
  0xe0   :  { %3314 = vmatpush1.bf16.msra.mxu0 %v4957_v44  ;;  %3478 = vmatpush1.bf16.msra.mxu1 %v4959_v45  ;;  %v5022_v44 = vcombine.high %v388_v37, %v392_v38  ;;  %v5024_v45 = vcombine.high %v389_v39, %v393_v41  ;;  %v449_v39 = vld [vmem:[#allocation2 + $0xaa8] sm:$0xff]  ;;  %v5071_v41 = vcombine.low %v437_v30, %v441_v31 }
  0xe1   :  { %3315 = vmatprep.subr.bf16.mxu0 %v4966_v46  ;;  %3479 = vmatprep.subr.bf16.mxu1 %v4968_v50  ;;  %v396_v46 = vld [vmem:[#allocation2 + $0x900] sm:$0xff]  ;;  %v5021_v50 = vcombine.low %v388_v37, %v392_v38  ;;  %v445_v38 = vld [vmem:[#allocation2 + $0xa88] sm:$0xff] }
  0xe2   :  { %v448_v37 = vld [vmem:[#allocation2 + $0xaa0] sm:$0xff] }
  0xe4   :  { %3316 = vmatpush1.bf16.msra.mxu0 %v4965_v52  ;;  %3480 = vmatpush1.bf16.msra.mxu1 %v4967_v54  ;;  %v5030_v52 = vcombine.high %v396_v46, %v400_v47  ;;  %v5032_v54 = vcombine.high %v397_v48, %v401_v49  ;;  %v5079_v49 = vcombine.low %v445_v38, %v449_v39 }
  0xe5   :  { %3317 = vmatprep.subr.bf16.mxu0 %v4974_v55  ;;  %3481 = vmatprep.subr.bf16.mxu1 %v4976_v60  ;;  %v404_v55 = vld [vmem:[#allocation2 + $0x940] sm:$0xff]  ;;  %v5029_v60 = vcombine.low %v396_v46, %v400_v47  ;;  %v453_v46 = vld [vmem:[#allocation2 + $0xac8] sm:$0xff] }
  0xe6   :  { %v457_v47 = vld [vmem:[#allocation2 + $0xae8] sm:$0xff] }
  0xe8   :  { %3318 = vmatpush1.bf16.msra.mxu0 %v4973_v62  ;;  %3482 = vmatpush1.bf16.msra.mxu1 %v4975_v63  ;;  %v5038_v62 = vcombine.high %v404_v55, %v408_v56  ;;  %v5040_v63 = vcombine.high %v405_v58, %v409_v59  ;;  %v5087_v59 = vcombine.low %v453_v46, %v457_v47 }
  0xe9   :  { %3319 = vmatprep.subr.bf16.mxu0 %v4982_v0  ;;  %3483 = vmatprep.subr.bf16.mxu1 %v4984_v4  ;;  %v412_v0 = vld [vmem:[#allocation2 + $0x980] sm:$0xff]  ;;  %v5037_v4 = vcombine.low %v404_v55, %v408_v56  ;;  %v461_v55 = vld [vmem:[#allocation2 + $0xb08] sm:$0xff] }
  0xea   :  { %v465_v56 = vld [vmem:[#allocation2 + $0xb28] sm:$0xff] }
  0xec   :  { %3320 = vmatpush1.bf16.msra.mxu0 %v4981_v6  ;;  %3484 = vmatpush1.bf16.msra.mxu1 %v4983_v7  ;;  %v5046_v6 = vcombine.high %v412_v0, %v416_v1  ;;  %v5048_v7 = vcombine.high %v413_v2, %v417_v3  ;;  %v5095_v3 = vcombine.low %v461_v55, %v465_v56 }
  0xed   :  { %3321 = vmatprep.subr.bf16.mxu0 %v4990_v8  ;;  %3485 = vmatprep.subr.bf16.mxu1 %v4992_v13  ;;  %v420_v8 = vld [vmem:[#allocation2 + $0x9c0] sm:$0xff]  ;;  %v5045_v13 = vcombine.low %v412_v0, %v416_v1  ;;  %v469_v0 = vld [vmem:[#allocation2 + $0xb48] sm:$0xff] }
  0xee   :  { %v5053_v22 = vcombine.low %v420_v8, %v424_v9  ;;  %v473_v1 = vld [vmem:[#allocation2 + $0xb68] sm:$0xff] }
  0xf0   :  { %3322 = vmatpush1.bf16.msra.mxu0 %v4989_v16  ;;  %3486 = vmatpush1.bf16.msra.mxu1 %v4991_v18  ;;  %v5054_v16 = vcombine.high %v420_v8, %v424_v9  ;;  %v428_v18 = vld [vmem:[#allocation2 + $0xa00] sm:$0xff]  ;;  %v477_v8 = vld [vmem:[#allocation2 + $0xb88] sm:$0xff] }
  0xf1   :  { %3332 = vmatprep.subr.bf16.mxu0 %v4998_v19  ;;  %3496 = vmatprep.subr.bf16.mxu1 %v5000_v53  ;;  %v432_v19 = vld [vmem:[#allocation2 + $0xa20] sm:$0xff]  ;;  %v5055_v53 = vcombine.low %v421_v10, %v425_v11  ;;  %v481_v9 = vld [vmem:[#allocation2 + $0xba8] sm:$0xff]  ;;  %v5103_v11 = vcombine.low %v469_v0, %v473_v1 }
  0xf3   :  { %3324 = vmatmul.mubr.bf16.vlgmr.msra.gmra.mrb[0].mxu0 %v5933_v25  ;;  %3488 = vmatmul.mubr.bf16.vlgmr.msra.gmra.mrb[0].mxu1 %v5933_v25 }
  0xf4   :  { %3333 = vmatpush1.bf16.msra.mxu0 %v4997_v26  ;;  %3497 = vmatpush1.bf16.msra.mxu1 %v4999_v27  ;;  %v5062_v26 = vcombine.high %v428_v18, %v432_v19  ;;  %v5064_v27 = vcombine.high %v429_v20, %v433_v21  ;;  %v5111_v21 = vcombine.low %v477_v8, %v481_v9 }
  0xf5   :  { %3334 = vmatprep.subr.bf16.mxu0 %v5006_v28  ;;  %3498 = vmatprep.subr.bf16.mxu1 %v5008_v32  ;;  %v436_v28 = vld [vmem:[#allocation2 + $0xa40] sm:$0xff]  ;;  %v5061_v32 = vcombine.low %v428_v18, %v432_v19  ;;  %v485_v18 = vld [vmem:[#allocation2 + $0xbc8] sm:$0xff] }
  0xf6   :  { %3364 = vmatprep.mubr.bf16.mxu0 %v5937_v34  ;;  %3528 = vmatprep.mubr.bf16.mxu1 %v5937_v34  ;;  %v489_v19 = vld [vmem:[#allocation2 + $0xbe8] sm:$0xff] }
  0xf8   :  { %3335 = vmatpush1.bf16.msra.mxu0 %v5005_v15  ;;  %3499 = vmatpush1.bf16.msra.mxu1 %v5007_v35  ;;  %v5070_v15 = vcombine.high %v436_v28, %v440_v29  ;;  %v5072_v35 = vcombine.high %v437_v30, %v441_v31  ;;  %v5119_v31 = vcombine.low %v485_v18, %v489_v19 }
  0xf9   :  { %3336 = vmatprep.subr.bf16.mxu0 %v5014_v36  ;;  %3500 = vmatprep.subr.bf16.mxu1 %v5016_v40  ;;  %v444_v36 = vld [vmem:[#allocation2 + $0xa80] sm:$0xff]  ;;  %v5069_v40 = vcombine.low %v436_v28, %v440_v29  ;;  %v493_v28 = vld [vmem:[#allocation2 + $0xc08] sm:$0xff] }
  0xfa   :  { %v5077_v48 = vcombine.low %v444_v36, %v448_v37  ;;  %v497_v29 = vld [vmem:[#allocation2 + $0xc28] sm:$0xff] }
  0xfc   :  { %3337 = vmatpush1.bf16.msra.mxu0 %v5013_v42  ;;  %3501 = vmatpush1.bf16.msra.mxu1 %v5015_v43  ;;  %v5078_v42 = vcombine.high %v444_v36, %v448_v37  ;;  %v5080_v43 = vcombine.high %v445_v38, %v449_v39  ;;  %v5945_v36 = vcombine.low %v5929_v24, %v5929_v24  ;;  %v501_v37 = vld [vmem:[#allocation2 + $0xc48] sm:$0xff]  ;;  %v5950_v39 = vld [vmem:[%s6035_s0 + $0x18] sm:$0xff]  ;;  %s5785_s0 = smov [#allocation13]  }
  0xfd   :  { %3338 = vmatprep.subr.bf16.mxu0 %v5022_v44  ;;  %3502 = vmatprep.subr.bf16.mxu1 %v5024_v45  ;;  %v452_v44 = vld [vmem:[#allocation2 + $0xac0] sm:$0xff]  ;;  %v505_v38 = vld [vmem:[#allocation2 + $0xc68] sm:$0xff]  ;;  %v5954_v24 = vcombine.high %v5950_v39, %v5950_v39  ;;  %s4721_s9 = sshll.u32 %s5785_s0, 4  ;;  %s4722_s9 = int_to_ptr.vmem [resolvable:$true] %s4721_s9 }
  0xfe   :  { %v456_v45 = vld [vmem:[#allocation2 + $0xae0] sm:$0xff]  ;;  %s5741_s10 = scalar_lea.vmem %s4722_s9, 128  ;;  %p5746_p7 = scmp.lt.s32.totalorder %s4722_s9, %s4722_s9 }
  0xff   :  { %v5085_v58 = vcombine.low %v452_v44, %v456_v45  ;;  %p5742_p6 = scmp.ne.s32.totalorder %s4722_s9, %s5741_s10  ;;  %p5747_p8 = scmp.lt.s32.totalorder %s5741_s10, %s5741_s10 }
 0x100   :  { %3339 = vmatpush1.bf16.msra.mxu0 %v5021_v50  ;;  %3503 = vmatpush1.bf16.msra.mxu1 %v5023_v51  ;;  %v5086_v50 = vcombine.high %v452_v44, %v456_v45  ;;  %v5088_v51 = vcombine.high %v453_v46, %v457_v47  ;;  %v508_v44 = vld [vmem:[#allocation2 + $0xc80] sm:$0xff]  ;;  %v509_v46 = vld [vmem:[#allocation2 + $0xc88] sm:$0xff] }
 0x101   :  { %3340 = vmatprep.subr.bf16.mxu0 %v5030_v52  ;;  %3504 = vmatprep.subr.bf16.mxu1 %v5032_v54  ;;  %v460_v52 = vld [vmem:[#allocation2 + $0xb00] sm:$0xff]  ;;  %v513_v47 = vld [vmem:[#allocation2 + $0xca8] sm:$0xff]  ;;  %p5748_p9 = por %p5747_p8, %p5746_p7 }
 0x102   :  { %v464_v54 = vld [vmem:[#allocation2 + $0xb20] sm:$0xff] }
 0x103   :  { %v5093_v2 = vcombine.low %v460_v52, %v464_v54  ;;  %v512_v45 = vld [vmem:[#allocation2 + $0xca0] sm:$0xff]  ;;  %p5749_p10 = pnand %p5748_p9, %p5742_p6 }
 0x104   :  { %3341 = vmatpush1.bf16.msra.mxu0 %v5029_v60  ;;  %3505 = vmatpush1.bf16.msra.mxu1 %v5031_v61  ;;  %v5094_v60 = vcombine.high %v460_v52, %v464_v54  ;;  %v5096_v61 = vcombine.high %v461_v55, %v465_v56  ;;  %v516_v52 = vld [vmem:[#allocation2 + $0xcc0] sm:$0xff]  ;;  %v517_v55 = vld [vmem:[#allocation2 + $0xcc8] sm:$0xff] }
 0x105   :  { %3342 = vmatprep.subr.bf16.mxu0 %v5038_v62  ;;  %3506 = vmatprep.subr.bf16.mxu1 %v5040_v63  ;;  %v468_v62 = vld [vmem:[#allocation2 + $0xb40] sm:$0xff]  ;;  %v521_v56 = vld [vmem:[#allocation2 + $0xce8] sm:$0xff] }
 0x106   :  { %v472_v63 = vld [vmem:[#allocation2 + $0xb60] sm:$0xff] }
 0x107   :  { %v5101_v10 = vcombine.low %v468_v62, %v472_v63  ;;  %v520_v54 = vld [vmem:[#allocation2 + $0xce0] sm:$0xff] }
 0x108   :  { %3343 = vmatpush1.bf16.msra.mxu0 %v5037_v4  ;;  %3507 = vmatpush1.bf16.msra.mxu1 %v5039_v5  ;;  %v5102_v4 = vcombine.high %v468_v62, %v472_v63  ;;  %v5104_v5 = vcombine.high %v469_v0, %v473_v1  ;;  %v524_v62 = vld [vmem:[#allocation2 + $0xd00] sm:$0xff]  ;;  %v525_v0 = vld [vmem:[#allocation2 + $0xd08] sm:$0xff] }
 0x109   :  { %3344 = vmatprep.subr.bf16.mxu0 %v5046_v6  ;;  %3508 = vmatprep.subr.bf16.mxu1 %v5048_v7  ;;  %v476_v6 = vld [vmem:[#allocation2 + $0xb80] sm:$0xff]  ;;  %v529_v1 = vld [vmem:[#allocation2 + $0xd28] sm:$0xff] }
 0x10a   :  { %v480_v7 = vld [vmem:[#allocation2 + $0xba0] sm:$0xff] }
 0x10b   :  { %v5109_v20 = vcombine.low %v476_v6, %v480_v7  ;;  %v528_v63 = vld [vmem:[#allocation2 + $0xd20] sm:$0xff] }
 0x10c   :  { %3345 = vmatpush1.bf16.msra.mxu0 %v5045_v13  ;;  %3509 = vmatpush1.bf16.msra.mxu1 %v5047_v14  ;;  %v5110_v13 = vcombine.high %v476_v6, %v480_v7  ;;  %v5112_v14 = vcombine.high %v477_v8, %v481_v9  ;;  %v532_v6 = vld [vmem:[#allocation2 + $0xd40] sm:$0xff]  ;;  %v533_v8 = vld [vmem:[#allocation2 + $0xd48] sm:$0xff] }
 0x10d   :  { %3346 = vmatprep.subr.bf16.mxu0 %v5054_v16  ;;  %3510 = vmatprep.subr.bf16.mxu1 %v5056_v17  ;;  %v484_v16 = vld [vmem:[#allocation2 + $0xbc0] sm:$0xff]  ;;  %v537_v9 = vld [vmem:[#allocation2 + $0xd68] sm:$0xff] }
 0x10e   :  { %v488_v17 = vld [vmem:[#allocation2 + $0xbe0] sm:$0xff] }
 0x10f   :  { %v5117_v30 = vcombine.low %v484_v16, %v488_v17  ;;  %v536_v7 = vld [vmem:[#allocation2 + $0xd60] sm:$0xff] }
 0x110   :  { %3347 = vmatpush1.bf16.msra.mxu0 %v5053_v22  ;;  %3511 = vmatpush1.bf16.msra.mxu1 %v5055_v53  ;;  %v5118_v22 = vcombine.high %v484_v16, %v488_v17  ;;  %v5120_v53 = vcombine.high %v485_v18, %v489_v19  ;;  %v540_v16 = vld [vmem:[#allocation2 + $0xd80] sm:$0xff]  ;;  %v541_v18 = vld [vmem:[#allocation2 + $0xd88] sm:$0xff] }
 0x111   :  { %3348 = vmatprep.subr.bf16.mxu0 %v5062_v26  ;;  %3512 = vmatprep.subr.bf16.mxu1 %v5064_v27  ;;  %v492_v26 = vld [vmem:[#allocation2 + $0xc00] sm:$0xff]  ;;  %v545_v19 = vld [vmem:[#allocation2 + $0xda8] sm:$0xff] }
 0x112   :  { %v496_v27 = vld [vmem:[#allocation2 + $0xc20] sm:$0xff] }
 0x113   :  { %v544_v17 = vld [vmem:[#allocation2 + $0xda0] sm:$0xff] }
 0x114   :  { %3349 = vmatpush1.bf16.msra.mxu0 %v5061_v32  ;;  %3513 = vmatpush1.bf16.msra.mxu1 %v5063_v33  ;;  %v5126_v32 = vcombine.high %v492_v26, %v496_v27  ;;  %v5128_v33 = vcombine.high %v493_v28, %v497_v29 }
 0x115   :  { %3350 = vmatprep.subr.bf16.mxu0 %v5070_v15  ;;  %3514 = vmatprep.subr.bf16.mxu1 %v5072_v35  ;;  %v500_v15 = vld [vmem:[#allocation2 + $0xc40] sm:$0xff] }
 0x116   :  { %v504_v35 = vld [vmem:[#allocation2 + $0xc60] sm:$0xff] }
 0x118   :  { %3351 = vmatpush1.bf16.msra.mxu0 %v5069_v40  ;;  %3515 = vmatpush1.bf16.msra.mxu1 %v5071_v41  ;;  %v5125_v40 = vcombine.low %v492_v26, %v496_v27  ;;  %v5127_v41 = vcombine.low %v493_v28, %v497_v29  ;;  %v548_v26 = vld [vmem:[#allocation2 + $0xdc0] sm:$0xff]  ;;  %v549_v28 = vld [vmem:[#allocation2 + $0xdc8] sm:$0xff] }
 0x119   :  { %3352 = vmatprep.subr.bf16.mxu0 %v5078_v42  ;;  %3516 = vmatprep.subr.bf16.mxu1 %v5080_v43  ;;  %v5134_v42 = vcombine.high %v500_v15, %v504_v35  ;;  %v5136_v43 = vcombine.high %v501_v37, %v505_v38  ;;  %v552_v27 = vld [vmem:[#allocation2 + $0xde0] sm:$0xff]  ;;  %v553_v29 = vld [vmem:[#allocation2 + $0xde8] sm:$0xff] }
 0x11c   :  { %3353 = vmatpush1.bf16.msra.mxu0 %v5077_v48  ;;  %3517 = vmatpush1.bf16.msra.mxu1 %v5079_v49  ;;  %v5133_v48 = vcombine.low %v500_v15, %v504_v35  ;;  %v5135_v49 = vcombine.low %v501_v37, %v505_v38  ;;  %v556_v15 = vld [vmem:[#allocation2 + $0xe00] sm:$0xff]  ;;  %v557_v37 = vld [vmem:[#allocation2 + $0xe08] sm:$0xff] }
 0x11d   :  { %3354 = vmatprep.subr.bf16.mxu0 %v5086_v50  ;;  %3518 = vmatprep.subr.bf16.mxu1 %v5088_v51  ;;  %v5142_v50 = vcombine.high %v508_v44, %v512_v45  ;;  %v5144_v51 = vcombine.high %v509_v46, %v513_v47  ;;  %v560_v35 = vld [vmem:[#allocation2 + $0xe20] sm:$0xff]  ;;  %v561_v38 = vld [vmem:[#allocation2 + $0xe28] sm:$0xff] }
 0x120   :  { %3355 = vmatpush1.bf16.msra.mxu0 %v5085_v58  ;;  %3519 = vmatpush1.bf16.msra.mxu1 %v5087_v59  ;;  %v5141_v58 = vcombine.low %v508_v44, %v512_v45  ;;  %v5143_v59 = vcombine.low %v509_v46, %v513_v47  ;;  %v564_v44 = vld [vmem:[#allocation2 + $0xe40] sm:$0xff]  ;;  %v565_v46 = vld [vmem:[#allocation2 + $0xe48] sm:$0xff] }
 0x121   :  { %3356 = vmatprep.subr.bf16.mxu0 %v5094_v60  ;;  %3520 = vmatprep.subr.bf16.mxu1 %v5096_v61  ;;  %v5150_v60 = vcombine.high %v516_v52, %v520_v54  ;;  %v5152_v61 = vcombine.high %v517_v55, %v521_v56  ;;  %v568_v45 = vld [vmem:[#allocation2 + $0xe60] sm:$0xff]  ;;  %v569_v47 = vld [vmem:[#allocation2 + $0xe68] sm:$0xff] }
 0x124   :  { %3357 = vmatpush1.bf16.msra.mxu0 %v5093_v2  ;;  %3521 = vmatpush1.bf16.msra.mxu1 %v5095_v3  ;;  %v5149_v2 = vcombine.low %v516_v52, %v520_v54  ;;  %v5151_v3 = vcombine.low %v517_v55, %v521_v56  ;;  %v572_v52 = vld [vmem:[#allocation2 + $0xe80] sm:$0xff]  ;;  %v573_v55 = vld [vmem:[#allocation2 + $0xe88] sm:$0xff] }
 0x125   :  { %3358 = vmatprep.subr.bf16.mxu0 %v5102_v4  ;;  %3522 = vmatprep.subr.bf16.mxu1 %v5104_v5  ;;  %v5158_v4 = vcombine.high %v524_v62, %v528_v63  ;;  %v5160_v5 = vcombine.high %v525_v0, %v529_v1  ;;  %v576_v54 = vld [vmem:[#allocation2 + $0xea0] sm:$0xff]  ;;  %v577_v56 = vld [vmem:[#allocation2 + $0xea8] sm:$0xff] }
 0x128   :  { %3359 = vmatpush1.bf16.msra.mxu0 %v5101_v10  ;;  %3523 = vmatpush1.bf16.msra.mxu1 %v5103_v11  ;;  %v5157_v10 = vcombine.low %v524_v62, %v528_v63  ;;  %v5159_v11 = vcombine.low %v525_v0, %v529_v1  ;;  %v580_v62 = vld [vmem:[#allocation2 + $0xec0] sm:$0xff]  ;;  %v581_v0 = vld [vmem:[#allocation2 + $0xec8] sm:$0xff] }
 0x129   :  { %3360 = vmatprep.subr.bf16.mxu0 %v5110_v13  ;;  %3524 = vmatprep.subr.bf16.mxu1 %v5112_v14  ;;  %v5166_v13 = vcombine.high %v532_v6, %v536_v7  ;;  %v5168_v14 = vcombine.high %v533_v8, %v537_v9  ;;  %v584_v63 = vld [vmem:[#allocation2 + $0xee0] sm:$0xff]  ;;  %v585_v1 = vld [vmem:[#allocation2 + $0xee8] sm:$0xff] }
 0x12c   :  { %3361 = vmatpush1.bf16.msra.mxu0 %v5109_v20  ;;  %3525 = vmatpush1.bf16.msra.mxu1 %v5111_v21  ;;  %v5165_v20 = vcombine.low %v532_v6, %v536_v7  ;;  %v5167_v21 = vcombine.low %v533_v8, %v537_v9  ;;  %v588_v6 = vld [vmem:[#allocation2 + $0xf00] sm:$0xff]  ;;  %v589_v8 = vld [vmem:[#allocation2 + $0xf08] sm:$0xff] }
 0x12d   :  { %3362 = vmatprep.subr.bf16.mxu0 %v5118_v22  ;;  %3526 = vmatprep.subr.bf16.mxu1 %v5120_v53  ;;  %v5174_v22 = vcombine.high %v540_v16, %v544_v17  ;;  %v5176_v53 = vcombine.high %v541_v18, %v545_v19  ;;  %v592_v7 = vld [vmem:[#allocation2 + $0xf20] sm:$0xff]  ;;  %v593_v9 = vld [vmem:[#allocation2 + $0xf28] sm:$0xff] }
 0x130   :  { %3363 = vmatpush1.bf16.msra.mxu0 %v5117_v30  ;;  %3527 = vmatpush1.bf16.msra.mxu1 %v5119_v31  ;;  %v5173_v30 = vcombine.low %v540_v16, %v544_v17  ;;  %v5175_v31 = vcombine.low %v541_v18, %v545_v19  ;;  %v596_v16 = vld [vmem:[#allocation2 + $0xf40] sm:$0xff]  ;;  %v597_v18 = vld [vmem:[#allocation2 + $0xf48] sm:$0xff] }
 0x131   :  { %3373 = vmatprep.subr.bf16.mxu0 %v5126_v32  ;;  %3537 = vmatprep.subr.bf16.mxu1 %v5128_v33  ;;  %v5182_v32 = vcombine.high %v548_v26, %v552_v27  ;;  %v5184_v33 = vcombine.high %v549_v28, %v553_v29  ;;  %v600_v17 = vld [vmem:[#allocation2 + $0xf60] sm:$0xff]  ;;  %v601_v19 = vld [vmem:[#allocation2 + $0xf68] sm:$0xff] }
 0x133   :  { %3365 = vmatmul.mubr.bf16.vlgmr.msra.gmra.mrb[0].mxu0 %v5945_v36  ;;  %3529 = vmatmul.mubr.bf16.vlgmr.msra.gmra.mrb[0].mxu1 %v5945_v36 }
 0x134   :  { %3374 = vmatpush1.bf16.msra.mxu0 %v5125_v40  ;;  %3538 = vmatpush1.bf16.msra.mxu1 %v5127_v41  ;;  %v5181_v40 = vcombine.low %v548_v26, %v552_v27  ;;  %v5183_v41 = vcombine.low %v549_v28, %v553_v29  ;;  %v604_v26 = vld [vmem:[#allocation2 + $0xf80] sm:$0xff]  ;;  %v605_v28 = vld [vmem:[#allocation2 + $0xf88] sm:$0xff] }
 0x135   :  { %3375 = vmatprep.subr.bf16.mxu0 %v5134_v42  ;;  %3539 = vmatprep.subr.bf16.mxu1 %v5136_v43  ;;  %v5190_v42 = vcombine.high %v556_v15, %v560_v35  ;;  %v5192_v43 = vcombine.high %v557_v37, %v561_v38  ;;  %v608_v27 = vld [vmem:[#allocation2 + $0xfa0] sm:$0xff]  ;;  %v609_v29 = vld [vmem:[#allocation2 + $0xfa8] sm:$0xff] }
 0x136   :  { %3405 = vmatprep.mubr.bf16.mxu0 %v5954_v24  ;;  %3569 = vmatprep.mubr.bf16.mxu1 %v5954_v24 }
 0x138   :  { %3376 = vmatpush1.bf16.msra.mxu0 %v5133_v48  ;;  %3540 = vmatpush1.bf16.msra.mxu1 %v5135_v49  ;;  %v5189_v48 = vcombine.low %v556_v15, %v560_v35  ;;  %v5191_v49 = vcombine.low %v557_v37, %v561_v38  ;;  %v612_v15 = vld [vmem:[#allocation2 + $0xfc0] sm:$0xff]  ;;  %v613_v37 = vld [vmem:[#allocation2 + $0xfc8] sm:$0xff] }
 0x139   :  { %3377 = vmatprep.subr.bf16.mxu0 %v5142_v50  ;;  %3541 = vmatprep.subr.bf16.mxu1 %v5144_v51  ;;  %v5198_v50 = vcombine.high %v564_v44, %v568_v45  ;;  %v5200_v51 = vcombine.high %v565_v46, %v569_v47  ;;  %v616_v35 = vld [vmem:[#allocation2 + $0xfe0] sm:$0xff]  ;;  %v617_v38 = vld [vmem:[#allocation2 + $0xfe8] sm:$0xff] }
 0x13c   :  { %3378 = vmatpush1.bf16.msra.mxu0 %v5141_v58  ;;  %3542 = vmatpush1.bf16.msra.mxu1 %v5143_v59  ;;  %v5197_v58 = vcombine.low %v564_v44, %v568_v45  ;;  %v5199_v59 = vcombine.low %v565_v46, %v569_v47  ;;  %v110_v44 = vld [vmem:[#allocation2 + $0x10] sm:$0xff]  ;;  %v111_v46 = vld [vmem:[#allocation2 + $0x18] sm:$0xff] }
 0x13d   :  { %3379 = vmatprep.subr.bf16.mxu0 %v5150_v60  ;;  %3543 = vmatprep.subr.bf16.mxu1 %v5152_v61  ;;  %v5206_v60 = vcombine.high %v572_v52, %v576_v54  ;;  %v5208_v61 = vcombine.high %v573_v55, %v577_v56  ;;  %v114_v45 = vld [vmem:[#allocation2 + $0x30] sm:$0xff]  ;;  %v115_v47 = vld [vmem:[#allocation2 + $0x38] sm:$0xff] }
 0x140   :  { %3380 = vmatpush1.bf16.msra.mxu0 %v5149_v2  ;;  %3544 = vmatpush1.bf16.msra.mxu1 %v5151_v3  ;;  %v5205_v2 = vcombine.low %v572_v52, %v576_v54  ;;  %v5207_v3 = vcombine.low %v573_v55, %v577_v56  ;;  %v118_v52 = vld [vmem:[#allocation2 + $0x50] sm:$0xff]  ;;  %v5962_v55 = vcombine.low %v5950_v39, %v5950_v39  ;;  %v119_v56 = vld [vmem:[#allocation2 + $0x58] sm:$0xff] }
 0x141   :  { %3381 = vmatprep.subr.bf16.mxu0 %v5158_v4  ;;  %3545 = vmatprep.subr.bf16.mxu1 %v5160_v5  ;;  %v5214_v4 = vcombine.high %v580_v62, %v584_v63  ;;  %v5216_v5 = vcombine.high %v581_v0, %v585_v1  ;;  %v122_v54 = vld [vmem:[#allocation2 + $0x70] sm:$0xff] }
 0x142   :  { %v4753_v39 = vcombine.low %v118_v52, %v122_v54 }
 0x144   :  { %3382 = vmatpush1.bf16.msra.mxu0 %v5157_v10  ;;  %3546 = vmatpush1.bf16.msra.mxu1 %v5159_v11  ;;  %v5213_v10 = vcombine.low %v580_v62, %v584_v63  ;;  %v5215_v11 = vcombine.low %v581_v0, %v585_v1  ;;  %v126_v63 = vld [vmem:[#allocation2 + $0x90] sm:$0xff]  ;;  %v127_v1 = vld [vmem:[#allocation2 + $0x98] sm:$0xff] }
 0x145   :  { %3383 = vmatprep.subr.bf16.mxu0 %v5166_v13  ;;  %3547 = vmatprep.subr.bf16.mxu1 %v5168_v14  ;;  %v5222_v13 = vcombine.high %v588_v6, %v592_v7  ;;  %v5224_v14 = vcombine.high %v589_v8, %v593_v9  ;;  %v130_v0 = vld [vmem:[#allocation2 + $0xb0] sm:$0xff] }
 0x148   :  { %3384 = vmatpush1.bf16.msra.mxu0 %v5165_v20  ;;  %3548 = vmatpush1.bf16.msra.mxu1 %v5167_v21  ;;  %v5221_v20 = vcombine.low %v588_v6, %v592_v7  ;;  %v5223_v21 = vcombine.low %v589_v8, %v593_v9  ;;  %v134_v6 = vld [vmem:[#allocation2 + $0xd0] sm:$0xff]  ;;  %v135_v8 = vld [vmem:[#allocation2 + $0xd8] sm:$0xff] }
 0x149   :  { %3385 = vmatprep.subr.bf16.mxu0 %v5174_v22  ;;  %3549 = vmatprep.subr.bf16.mxu1 %v5176_v53  ;;  %v5230_v22 = vcombine.high %v596_v16, %v600_v17  ;;  %v5232_v53 = vcombine.high %v597_v18, %v601_v19  ;;  %v138_v7 = vld [vmem:[#allocation2 + $0xf0] sm:$0xff]  ;;  %v139_v9 = vld [vmem:[#allocation2 + $0xf8] sm:$0xff] }
 0x14c   :  { %3386 = vmatpush1.bf16.msra.mxu0 %v5173_v30  ;;  %3550 = vmatpush1.bf16.msra.mxu1 %v5175_v31  ;;  %v5229_v30 = vcombine.low %v596_v16, %v600_v17  ;;  %v5231_v31 = vcombine.low %v597_v18, %v601_v19  ;;  %v142_v16 = vld [vmem:[#allocation2 + $0x110] sm:$0xff]  ;;  %v143_v18 = vld [vmem:[#allocation2 + $0x118] sm:$0xff] }
 0x14d   :  { %3387 = vmatprep.subr.bf16.mxu0 %v5182_v32  ;;  %3551 = vmatprep.subr.bf16.mxu1 %v5184_v33  ;;  %v5238_v32 = vcombine.high %v604_v26, %v608_v27  ;;  %v5240_v33 = vcombine.high %v605_v28, %v609_v29  ;;  %v146_v17 = vld [vmem:[#allocation2 + $0x130] sm:$0xff]  ;;  %v147_v19 = vld [vmem:[#allocation2 + $0x138] sm:$0xff] }
 0x150   :  { %3388 = vmatpush1.bf16.msra.mxu0 %v5181_v40  ;;  %3552 = vmatpush1.bf16.msra.mxu1 %v5183_v41  ;;  %v5237_v40 = vcombine.low %v604_v26, %v608_v27  ;;  %v5239_v41 = vcombine.low %v605_v28, %v609_v29  ;;  %v154_v26 = vld [vmem:[#allocation2 + $0x170] sm:$0xff]  ;;  %v151_v27 = vld [vmem:[#allocation2 + $0x158] sm:$0xff]  ;;  %v4777_v29 = vcombine.low %v142_v16, %v146_v17 }
 0x151   :  { %3389 = vmatprep.subr.bf16.mxu0 %v5190_v42  ;;  %3553 = vmatprep.subr.bf16.mxu1 %v5192_v43  ;;  %v5246_v42 = vcombine.high %v612_v15, %v616_v35  ;;  %v5248_v43 = vcombine.high %v613_v37, %v617_v38  ;;  %v155_v28 = vld [vmem:[#allocation2 + $0x178] sm:$0xff] }
 0x154   :  { %3390 = vmatpush1.bf16.msra.mxu0 %v5189_v48  ;;  %3554 = vmatpush1.bf16.msra.mxu1 %v5191_v49  ;;  %v5245_v48 = vcombine.low %v612_v15, %v616_v35  ;;  %v5247_v49 = vcombine.low %v613_v37, %v617_v38  ;;  %v162_v15 = vld [vmem:[#allocation2 + $0x1b0] sm:$0xff]  ;;  %v159_v35 = vld [vmem:[#allocation2 + $0x198] sm:$0xff] }
 0x155   :  { %3391 = vmatprep.subr.bf16.mxu0 %v5198_v50  ;;  %3555 = vmatprep.subr.bf16.mxu1 %v5200_v51  ;;  %v4746_v50 = vcombine.high %v110_v44, %v114_v45  ;;  %v4748_v51 = vcombine.high %v111_v46, %v115_v47  ;;  %v163_v37 = vld [vmem:[#allocation2 + $0x1b8] sm:$0xff] }
 0x158   :  { %3392 = vmatpush1.bf16.msra.mxu0 %v5197_v58  ;;  %3556 = vmatpush1.bf16.msra.mxu1 %v5199_v59  ;;  %v123_v58 = vld [vmem:[#allocation2 + $0x78] sm:$0xff]  ;;  %v4745_v59 = vcombine.low %v110_v44, %v114_v45  ;;  %v170_v44 = vld [vmem:[#allocation2 + $0x1f0] sm:$0xff] }
 0x159   :  { %3393 = vmatprep.subr.bf16.mxu0 %v5206_v60  ;;  %3557 = vmatprep.subr.bf16.mxu1 %v5208_v61  ;;  %v4747_v60 = vcombine.low %v111_v46, %v115_v47  ;;  %v4754_v61 = vcombine.high %v118_v52, %v122_v54  ;;  %v4756_v62 = vcombine.high %v119_v56, %v123_v58  ;;  %v167_v45 = vld [vmem:[#allocation2 + $0x1d8] sm:$0xff]  ;;  %v178_v52 = vld [vmem:[#allocation2 + $0x230] sm:$0xff] }
 0x15a   :  { %v171_v46 = vld [vmem:[#allocation2 + $0x1f8] sm:$0xff] }
 0x15b   :  { %v175_v54 = vld [vmem:[#allocation2 + $0x218] sm:$0xff] }
 0x15c   :  { %3394 = vmatpush1.bf16.msra.mxu0 %v5205_v2  ;;  %3558 = vmatpush1.bf16.msra.mxu1 %v5207_v3  ;;  %v131_v2 = vld [vmem:[#allocation2 + $0xb8] sm:$0xff]  ;;  %v4755_v3 = vcombine.low %v119_v56, %v123_v58 }
 0x15d   :  { %3395 = vmatprep.subr.bf16.mxu0 %v5214_v4  ;;  %3559 = vmatprep.subr.bf16.mxu1 %v5216_v5  ;;  %v4762_v4 = vcombine.high %v126_v63, %v130_v0  ;;  %v4764_v5 = vcombine.high %v127_v1, %v131_v2  ;;  %v179_v56 = vld [vmem:[#allocation2 + $0x238] sm:$0xff] }
 0x160   :  { %3396 = vmatpush1.bf16.msra.mxu0 %v5213_v10  ;;  %3560 = vmatpush1.bf16.msra.mxu1 %v5215_v11  ;;  %v4761_v10 = vcombine.low %v126_v63, %v130_v0  ;;  %v4763_v11 = vcombine.low %v127_v1, %v131_v2  ;;  %v186_v63 = vld [vmem:[#allocation2 + $0x270] sm:$0xff]  ;;  %v183_v0 = vld [vmem:[#allocation2 + $0x258] sm:$0xff] }
 0x161   :  { %3397 = vmatprep.subr.bf16.mxu0 %v5222_v13  ;;  %3561 = vmatprep.subr.bf16.mxu1 %v5224_v14  ;;  %v4770_v13 = vcombine.high %v134_v6, %v138_v7  ;;  %v4772_v14 = vcombine.high %v135_v8, %v139_v9  ;;  %v187_v1 = vld [vmem:[#allocation2 + $0x278] sm:$0xff] }
 0x164   :  { %3398 = vmatpush1.bf16.msra.mxu0 %v5221_v20  ;;  %3562 = vmatpush1.bf16.msra.mxu1 %v5223_v21  ;;  %v4769_v20 = vcombine.low %v134_v6, %v138_v7  ;;  %v4771_v21 = vcombine.low %v135_v8, %v139_v9  ;;  %v194_v6 = vld [vmem:[#allocation2 + $0x2b0] sm:$0xff]  ;;  %v191_v7 = vld [vmem:[#allocation2 + $0x298] sm:$0xff] }
 0x165   :  { %3399 = vmatprep.subr.bf16.mxu0 %v5230_v22  ;;  %3563 = vmatprep.subr.bf16.mxu1 %v5232_v53  ;;  %v4778_v22 = vcombine.high %v142_v16, %v146_v17  ;;  %v150_v53 = vld [vmem:[#allocation2 + $0x150] sm:$0xff]  ;;  %v195_v8 = vld [vmem:[#allocation2 + $0x2b8] sm:$0xff] }
 0x166   :  { %v4785_v38 = vcombine.low %v150_v53, %v154_v26  ;;  %v202_v16 = vld [vmem:[#allocation2 + $0x2f0] sm:$0xff]  ;;  %v199_v17 = vld [vmem:[#allocation2 + $0x2d8] sm:$0xff] }
 0x168   :  { %3400 = vmatpush1.bf16.msra.mxu0 %v5229_v30  ;;  %3564 = vmatpush1.bf16.msra.mxu1 %v5231_v31  ;;  %v4779_v30 = vcombine.low %v143_v18, %v147_v19  ;;  %v4786_v31 = vcombine.high %v150_v53, %v154_v26  ;;  %v210_v53 = vld [vmem:[#allocation2 + $0x330] sm:$0xff]  ;;  %v207_v26 = vld [vmem:[#allocation2 + $0x318] sm:$0xff] }
 0x169   :  { %3401 = vmatprep.subr.bf16.mxu0 %v5238_v32  ;;  %3565 = vmatprep.subr.bf16.mxu1 %v5240_v33  ;;  %v4788_v32 = vcombine.high %v151_v27, %v155_v28  ;;  %v158_v33 = vld [vmem:[#allocation2 + $0x190] sm:$0xff] }
 0x16a   :  { %v4793_v47 = vcombine.low %v158_v33, %v162_v15 }
 0x16c   :  { %3402 = vmatpush1.bf16.msra.mxu0 %v5237_v40  ;;  %3566 = vmatpush1.bf16.msra.mxu1 %v5239_v41  ;;  %v4787_v40 = vcombine.low %v151_v27, %v155_v28  ;;  %v4794_v41 = vcombine.high %v158_v33, %v162_v15  ;;  %v211_v27 = vld [vmem:[#allocation2 + $0x338] sm:$0xff]  ;;  %v218_v33 = vld [vmem:[#allocation2 + $0x370] sm:$0xff] }
 0x16d   :  { %3403 = vmatprep.subr.bf16.mxu0 %v5246_v42  ;;  %3567 = vmatprep.subr.bf16.mxu1 %v5248_v43  ;;  %v4796_v42 = vcombine.high %v159_v35, %v163_v37  ;;  %v166_v43 = vld [vmem:[#allocation2 + $0x1d0] sm:$0xff]  ;;  %v215_v15 = vld [vmem:[#allocation2 + $0x358] sm:$0xff] }
 0x16e   :  { %v4801_v58 = vcombine.low %v166_v43, %v170_v44 }
 0x170   :  { %3404 = vmatpush1.bf16.msra.mxu0 %v5245_v48  ;;  %3568 = vmatpush1.bf16.msra.mxu1 %v5247_v49  ;;  %v4795_v48 = vcombine.low %v159_v35, %v163_v37  ;;  %v4802_v49 = vcombine.high %v166_v43, %v170_v44  ;;  %v219_v35 = vld [vmem:[#allocation2 + $0x378] sm:$0xff]  ;;  %v226_v43 = vld [vmem:[#allocation2 + $0x3b0] sm:$0xff] }
 0x171   :  { %3578 = vmatprep.subr.bf16.mxu0 %v4746_v50  ;;  %3742 = vmatprep.subr.bf16.mxu1 %v4748_v51  ;;  %v4804_v50 = vcombine.high %v167_v45, %v171_v46  ;;  %v174_v51 = vld [vmem:[#allocation2 + $0x210] sm:$0xff]  ;;  %v223_v44 = vld [vmem:[#allocation2 + $0x398] sm:$0xff] }
 0x172   :  { %v4809_v2 = vcombine.low %v174_v51, %v178_v52 }
 0x173   :  { %3406 = vmatmul.mubr.bf16.vlgmr.msra.gmra.mrb[0].mxu0 %v5962_v55  ;;  %3570 = vmatmul.mubr.bf16.vlgmr.msra.gmra.mrb[0].mxu1 %v5962_v55 }
 0x174   :  { %3579 = vmatpush1.bf16.msra.mxu0 %v4745_v59  ;;  %3743 = vmatpush1.bf16.msra.mxu1 %v4747_v60  ;;  %v4803_v59 = vcombine.low %v167_v45, %v171_v46  ;;  %v4810_v60 = vcombine.high %v174_v51, %v178_v52  ;;  %v227_v45 = vld [vmem:[#allocation2 + $0x3b8] sm:$0xff]  ;;  %v234_v51 = vld [vmem:[#allocation2 + $0x3f0] sm:$0xff] }
 0x175   :  { %3580 = vmatprep.subr.bf16.mxu0 %v4754_v61  ;;  %3744 = vmatprep.subr.bf16.mxu1 %v4756_v62  ;;  %v4812_v61 = vcombine.high %v175_v54, %v179_v56  ;;  %v182_v62 = vld [vmem:[#allocation2 + $0x250] sm:$0xff]  ;;  %v231_v52 = vld [vmem:[#allocation2 + $0x3d8] sm:$0xff] }
 0x176   :  { %3610 = vmatprep.mubr.bf16.mxu0 %v5905_v57  ;;  %3774 = vmatprep.mubr.bf16.mxu1 %v5905_v57  ;;  %v4780_v57 = vcombine.high %v143_v18, %v147_v19  ;;  %v4817_v9 = vcombine.low %v182_v62, %v186_v63  ;;  %v203_v18 = vld [vmem:[#allocation2 + $0x2f8] sm:$0xff] }
 0x178   :  { %3581 = vmatpush1.bf16.msra.mxu0 %v4753_v39  ;;  %3745 = vmatpush1.bf16.msra.mxu1 %v4755_v3  ;;  %v4811_v39 = vcombine.low %v175_v54, %v179_v56  ;;  %v4818_v3 = vcombine.high %v182_v62, %v186_v63  ;;  %v235_v54 = vld [vmem:[#allocation2 + $0x3f8] sm:$0xff]  ;;  %v242_v62 = vld [vmem:[#allocation2 + $0x430] sm:$0xff] }
 0x179   :  { %3582 = vmatprep.subr.bf16.mxu0 %v4762_v4  ;;  %3746 = vmatprep.subr.bf16.mxu1 %v4764_v5  ;;  %v4820_v4 = vcombine.high %v183_v0, %v187_v1  ;;  %v190_v5 = vld [vmem:[#allocation2 + $0x290] sm:$0xff]  ;;  %v239_v63 = vld [vmem:[#allocation2 + $0x418] sm:$0xff] }
 0x17a   :  { %v4825_v19 = vcombine.low %v190_v5, %v194_v6 }
 0x17c   :  { %3583 = vmatpush1.bf16.msra.mxu0 %v4761_v10  ;;  %3747 = vmatpush1.bf16.msra.mxu1 %v4763_v11  ;;  %v4819_v10 = vcombine.low %v183_v0, %v187_v1  ;;  %v4826_v11 = vcombine.high %v190_v5, %v194_v6  ;;  %v243_v0 = vld [vmem:[#allocation2 + $0x438] sm:$0xff]  ;;  %v250_v5 = vld [vmem:[#allocation2 + $0x470] sm:$0xff] }
 0x17d   :  { %3584 = vmatprep.subr.bf16.mxu0 %v4770_v13  ;;  %3748 = vmatprep.subr.bf16.mxu1 %v4772_v14  ;;  %v4828_v13 = vcombine.high %v191_v7, %v195_v8  ;;  %v198_v14 = vld [vmem:[#allocation2 + $0x2d0] sm:$0xff]  ;;  %v247_v6 = vld [vmem:[#allocation2 + $0x458] sm:$0xff] }
 0x17e   :  { %v4833_v28 = vcombine.low %v198_v14, %v202_v16 }
 0x180   :  { %3585 = vmatpush1.bf16.msra.mxu0 %v4769_v20  ;;  %3749 = vmatpush1.bf16.msra.mxu1 %v4771_v21  ;;  %v4827_v20 = vcombine.low %v191_v7, %v195_v8  ;;  %v4834_v21 = vcombine.high %v198_v14, %v202_v16  ;;  %v251_v7 = vld [vmem:[#allocation2 + $0x478] sm:$0xff]  ;;  %v258_v14 = vld [vmem:[#allocation2 + $0x4b0] sm:$0xff] }
 0x181   :  { %3586 = vmatprep.subr.bf16.mxu0 %v4778_v22  ;;  %3750 = vmatprep.subr.bf16.mxu1 %v4780_v57  ;;  %v4836_v22 = vcombine.high %v199_v17, %v203_v18  ;;  %v206_v57 = vld [vmem:[#allocation2 + $0x310] sm:$0xff]  ;;  %v255_v16 = vld [vmem:[#allocation2 + $0x498] sm:$0xff] }
 0x182   :  { %v4841_v37 = vcombine.low %v206_v57, %v210_v53 }
 0x184   :  { %3587 = vmatpush1.bf16.msra.mxu0 %v4777_v29  ;;  %3751 = vmatpush1.bf16.msra.mxu1 %v4779_v30  ;;  %v4835_v29 = vcombine.low %v199_v17, %v203_v18  ;;  %v4842_v30 = vcombine.high %v206_v57, %v210_v53  ;;  %v259_v17 = vld [vmem:[#allocation2 + $0x4b8] sm:$0xff]  ;;  %v266_v57 = vld [vmem:[#allocation2 + $0x4f0] sm:$0xff] }
 0x185   :  { %3588 = vmatprep.subr.bf16.mxu0 %v4786_v31  ;;  %3752 = vmatprep.subr.bf16.mxu1 %v4788_v32  ;;  %v4844_v31 = vcombine.high %v207_v26, %v211_v27  ;;  %v214_v32 = vld [vmem:[#allocation2 + $0x350] sm:$0xff]  ;;  %v263_v53 = vld [vmem:[#allocation2 + $0x4d8] sm:$0xff] }
 0x186   :  { %v4849_v46 = vcombine.low %v214_v32, %v218_v33 }
 0x188   :  { %3589 = vmatpush1.bf16.msra.mxu0 %v4785_v38  ;;  %3753 = vmatpush1.bf16.msra.mxu1 %v4787_v40  ;;  %v4843_v38 = vcombine.low %v207_v26, %v211_v27  ;;  %v4850_v40 = vcombine.high %v214_v32, %v218_v33  ;;  %v267_v26 = vld [vmem:[#allocation2 + $0x4f8] sm:$0xff] }
 0x189   :  { %3590 = vmatprep.subr.bf16.mxu0 %v4794_v41  ;;  %3754 = vmatprep.subr.bf16.mxu1 %v4796_v42  ;;  %v4852_v41 = vcombine.high %v215_v15, %v219_v35  ;;  %v222_v42 = vld [vmem:[#allocation2 + $0x390] sm:$0xff]  ;;  %v271_v32 = vld [vmem:[#allocation2 + $0x518] sm:$0xff] }
 0x18a   :  { %v4857_v56 = vcombine.low %v222_v42, %v226_v43  ;;  %v275_v33 = vld [vmem:[#allocation2 + $0x538] sm:$0xff] }
 0x18c   :  { %3591 = vmatpush1.bf16.msra.mxu0 %v4793_v47  ;;  %3755 = vmatpush1.bf16.msra.mxu1 %v4795_v48  ;;  %v4851_v47 = vcombine.low %v215_v15, %v219_v35  ;;  %v4858_v48 = vcombine.high %v222_v42, %v226_v43  ;;  %v4899_v35 = vcombine.low %v263_v53, %v267_v26  ;;  %v283_v42 = vld [vmem:[#allocation2 + $0x578] sm:$0xff] }
 0x18d   :  { %3592 = vmatprep.subr.bf16.mxu0 %v4802_v49  ;;  %3756 = vmatprep.subr.bf16.mxu1 %v4804_v50  ;;  %v4860_v49 = vcombine.high %v223_v44, %v227_v45  ;;  %v230_v50 = vld [vmem:[#allocation2 + $0x3d0] sm:$0xff] }
 0x18e   :  { %v4865_v1 = vcombine.low %v230_v50, %v234_v51 }
 0x190   :  { %3593 = vmatpush1.bf16.msra.mxu0 %v4801_v58  ;;  %3757 = vmatpush1.bf16.msra.mxu1 %v4803_v59  ;;  %v4859_v58 = vcombine.low %v223_v44, %v227_v45  ;;  %v4866_v59 = vcombine.high %v230_v50, %v234_v51  ;;  %v4907_v44 = vcombine.low %v271_v32, %v275_v33  ;;  %v291_v50 = vld [vmem:[#allocation2 + $0x5b8] sm:$0xff] }
 0x191   :  { %3594 = vmatprep.subr.bf16.mxu0 %v4810_v60  ;;  %3758 = vmatprep.subr.bf16.mxu1 %v4812_v61  ;;  %v4868_v60 = vcombine.high %v231_v52, %v235_v54  ;;  %v238_v61 = vld [vmem:[#allocation2 + $0x410] sm:$0xff] }
 0x192   :  { %v4873_v8 = vcombine.low %v238_v61, %v242_v62 }
 0x194   :  { %3595 = vmatpush1.bf16.msra.mxu0 %v4809_v2  ;;  %3759 = vmatpush1.bf16.msra.mxu1 %v4811_v39  ;;  %v4867_v2 = vcombine.low %v231_v52, %v235_v54  ;;  %v4874_v39 = vcombine.high %v238_v61, %v242_v62  ;;  %v299_v61 = vld [vmem:[#allocation2 + $0x5f8] sm:$0xff] }
 0x195   :  { %3596 = vmatprep.subr.bf16.mxu0 %v4818_v3  ;;  %3760 = vmatprep.subr.bf16.mxu1 %v4820_v4  ;;  %v4876_v3 = vcombine.high %v239_v63, %v243_v0  ;;  %v246_v4 = vld [vmem:[#allocation2 + $0x450] sm:$0xff] }
 0x196   :  { %v4881_v18 = vcombine.low %v246_v4, %v250_v5 }
 0x198   :  { %3597 = vmatpush1.bf16.msra.mxu0 %v4817_v9  ;;  %3761 = vmatpush1.bf16.msra.mxu1 %v4819_v10  ;;  %v4875_v9 = vcombine.low %v239_v63, %v243_v0  ;;  %v4882_v10 = vcombine.high %v246_v4, %v250_v5  ;;  %v307_v4 = vld [vmem:[#allocation2 + $0x638] sm:$0xff] }
 0x199   :  { %3598 = vmatprep.subr.bf16.mxu0 %v4826_v11  ;;  %3762 = vmatprep.subr.bf16.mxu1 %v4828_v13  ;;  %v4884_v11 = vcombine.high %v247_v6, %v251_v7  ;;  %v254_v13 = vld [vmem:[#allocation2 + $0x490] sm:$0xff] }
 0x19a   :  { %v4889_v27 = vcombine.low %v254_v13, %v258_v14 }
 0x19c   :  { %3599 = vmatpush1.bf16.msra.mxu0 %v4825_v19  ;;  %3763 = vmatpush1.bf16.msra.mxu1 %v4827_v20  ;;  %v4883_v19 = vcombine.low %v247_v6, %v251_v7  ;;  %v4890_v20 = vcombine.high %v254_v13, %v258_v14  ;;  %v315_v13 = vld [vmem:[#allocation2 + $0x678] sm:$0xff] }
 0x19d   :  { %3600 = vmatprep.subr.bf16.mxu0 %v4834_v21  ;;  %3764 = vmatprep.subr.bf16.mxu1 %v4836_v22  ;;  %v4892_v21 = vcombine.high %v255_v16, %v259_v17  ;;  %v262_v22 = vld [vmem:[#allocation2 + $0x4d0] sm:$0xff] }
 0x19e   :  { %v4897_v15 = vcombine.low %v262_v22, %v266_v57 }
 0x1a0   :  { %3601 = vmatpush1.bf16.msra.mxu0 %v4833_v28  ;;  %3765 = vmatpush1.bf16.msra.mxu1 %v4835_v29  ;;  %v4898_v28 = vcombine.high %v262_v22, %v266_v57  ;;  %v4900_v29 = vcombine.high %v263_v53, %v267_v26  ;;  %v323_v22 = vld [vmem:[#allocation2 + $0x6b8] sm:$0xff] }
 0x1a1   :  { %3602 = vmatprep.subr.bf16.mxu0 %v4842_v30  ;;  %3766 = vmatprep.subr.bf16.mxu1 %v4844_v31  ;;  %v270_v30 = vld [vmem:[#allocation2 + $0x510] sm:$0xff] }
 0x1a2   :  { %v274_v31 = vld [vmem:[#allocation2 + $0x530] sm:$0xff] }
 0x1a3   :  { %v4905_v43 = vcombine.low %v270_v30, %v274_v31 }
 0x1a4   :  { %3603 = vmatpush1.bf16.msra.mxu0 %v4841_v37  ;;  %3767 = vmatpush1.bf16.msra.mxu1 %v4843_v38  ;;  %v4906_v37 = vcombine.high %v270_v30, %v274_v31  ;;  %v278_v38 = vld [vmem:[#allocation2 + $0x550] sm:$0xff]  ;;  %v331_v30 = vld [vmem:[#allocation2 + $0x6f8] sm:$0xff] }
 0x1a5   :  { %3604 = vmatprep.subr.bf16.mxu0 %v4850_v40  ;;  %3768 = vmatprep.subr.bf16.mxu1 %v4852_v41  ;;  %v282_v40 = vld [vmem:[#allocation2 + $0x570] sm:$0xff]  ;;  %v279_v41 = vld [vmem:[#allocation2 + $0x558] sm:$0xff] }
 0x1a6   :  { %v4914_v45 = vcombine.high %v278_v38, %v282_v40  ;;  %v4913_v51 = vcombine.low %v278_v38, %v282_v40  ;;  %v4915_v52 = vcombine.low %v279_v41, %v283_v42  ;;  %v339_v38 = vld [vmem:[#allocation2 + $0x738] sm:$0xff] }
 0x1a8   :  { %3605 = vmatpush1.bf16.msra.mxu0 %v4849_v46  ;;  %3769 = vmatpush1.bf16.msra.mxu1 %v4851_v47  ;;  %v4916_v46 = vcombine.high %v279_v41, %v283_v42  ;;  %v286_v47 = vld [vmem:[#allocation2 + $0x590] sm:$0xff] }
 0x1a9   :  { %3606 = vmatprep.subr.bf16.mxu0 %v4858_v48  ;;  %3770 = vmatprep.subr.bf16.mxu1 %v4860_v49  ;;  %v290_v48 = vld [vmem:[#allocation2 + $0x5b0] sm:$0xff]  ;;  %v287_v49 = vld [vmem:[#allocation2 + $0x598] sm:$0xff] }
 0x1aa   :  { %v4922_v54 = vcombine.high %v286_v47, %v290_v48  ;;  %v4921_v62 = vcombine.low %v286_v47, %v290_v48  ;;  %v4923_v63 = vcombine.low %v287_v49, %v291_v50  ;;  %v347_v47 = vld [vmem:[#allocation2 + $0x778] sm:$0xff] }
 0x1ac   :  { %3607 = vmatpush1.bf16.msra.mxu0 %v4857_v56  ;;  %3771 = vmatpush1.bf16.msra.mxu1 %v4859_v58  ;;  %v4924_v56 = vcombine.high %v287_v49, %v291_v50  ;;  %v294_v58 = vld [vmem:[#allocation2 + $0x5d0] sm:$0xff] }
 0x1ad   :  { %3608 = vmatprep.subr.bf16.mxu0 %v4866_v59  ;;  %3772 = vmatprep.subr.bf16.mxu1 %v4868_v60  ;;  %v298_v59 = vld [vmem:[#allocation2 + $0x5f0] sm:$0xff]  ;;  %v295_v60 = vld [vmem:[#allocation2 + $0x5d8] sm:$0xff] }
 0x1ae   :  { %v4930_v0 = vcombine.high %v294_v58, %v298_v59  ;;  %v4929_v5 = vcombine.low %v294_v58, %v298_v59  ;;  %v4931_v6 = vcombine.low %v295_v60, %v299_v61  ;;  %v355_v58 = vld [vmem:[#allocation2 + $0x7b8] sm:$0xff] }
 0x1b0   :  { %3609 = vmatpush1.bf16.msra.mxu0 %v4865_v1  ;;  %3773 = vmatpush1.bf16.msra.mxu1 %v4867_v2  ;;  %v4932_v1 = vcombine.high %v295_v60, %v299_v61  ;;  %v302_v2 = vld [vmem:[#allocation2 + $0x610] sm:$0xff] }
 0x1b1   :  { %3619 = vmatprep.subr.bf16.mxu0 %v4874_v39  ;;  %3783 = vmatprep.subr.bf16.mxu1 %v4876_v3  ;;  %v306_v39 = vld [vmem:[#allocation2 + $0x630] sm:$0xff]  ;;  %v303_v3 = vld [vmem:[#allocation2 + $0x618] sm:$0xff] }
 0x1b2   :  { %v4938_v7 = vcombine.high %v302_v2, %v306_v39  ;;  %v4937_v14 = vcombine.low %v302_v2, %v306_v39  ;;  %v363_v2 = vld [vmem:[#allocation2 + $0x7f8] sm:$0xff] }
 0x1b3   :  { %3611 = vmatmul.mubr.bf16.vlgmr.msra.gmra.mrb[4].mxu0 %v5911_v12  ;;  %3775 = vmatmul.mubr.bf16.vlgmr.msra.gmra.mrb[4].mxu1 %v5911_v12  ;;  %v4891_v12 = vcombine.low %v255_v16, %v259_v17  ;;  %v4939_v16 = vcombine.low %v303_v3, %v307_v4 }
 0x1b4   :  { %3620 = vmatpush1.bf16.msra.mxu0 %v4873_v8  ;;  %3784 = vmatpush1.bf16.msra.mxu1 %v4875_v9  ;;  %v4940_v8 = vcombine.high %v303_v3, %v307_v4  ;;  %v310_v9 = vld [vmem:[#allocation2 + $0x650] sm:$0xff] }
 0x1b5   :  { %3621 = vmatprep.subr.bf16.mxu0 %v4882_v10  ;;  %3785 = vmatprep.subr.bf16.mxu1 %v4884_v11  ;;  %v314_v10 = vld [vmem:[#allocation2 + $0x670] sm:$0xff]  ;;  %v311_v11 = vld [vmem:[#allocation2 + $0x658] sm:$0xff] }
 0x1b6   :  { %3651 = vmatprep.mubr.bf16.mxu0 %v5920_v23  ;;  %3815 = vmatprep.mubr.bf16.mxu1 %v5920_v23  ;;  %v4908_v23 = vcombine.high %v271_v32, %v275_v33  ;;  %v4946_v17 = vcombine.high %v310_v9, %v314_v10  ;;  %v4945_v57 = vcombine.low %v310_v9, %v314_v10  ;;  %v371_v9 = vld [vmem:[#allocation2 + $0x838] sm:$0xff] }
 0x1b7   :  { %v4947_v53 = vcombine.low %v311_v11, %v315_v13 }
 0x1b8   :  { %3622 = vmatpush1.bf16.msra.mxu0 %v4881_v18  ;;  %3786 = vmatpush1.bf16.msra.mxu1 %v4883_v19  ;;  %v4948_v18 = vcombine.high %v311_v11, %v315_v13  ;;  %v318_v19 = vld [vmem:[#allocation2 + $0x690] sm:$0xff] }
 0x1b9   :  { %3623 = vmatprep.subr.bf16.mxu0 %v4890_v20  ;;  %3787 = vmatprep.subr.bf16.mxu1 %v4892_v21  ;;  %v322_v20 = vld [vmem:[#allocation2 + $0x6b0] sm:$0xff]  ;;  %v319_v21 = vld [vmem:[#allocation2 + $0x698] sm:$0xff] }
 0x1ba   :  { %v4954_v26 = vcombine.high %v318_v19, %v322_v20  ;;  %v4953_v31 = vcombine.low %v318_v19, %v322_v20  ;;  %v4955_v32 = vcombine.low %v319_v21, %v323_v22  ;;  %v379_v19 = vld [vmem:[#allocation2 + $0x878] sm:$0xff] }
 0x1bc   :  { %3624 = vmatpush1.bf16.msra.mxu0 %v4889_v27  ;;  %3788 = vmatpush1.bf16.msra.mxu1 %v4891_v12  ;;  %v4956_v27 = vcombine.high %v319_v21, %v323_v22  ;;  %v326_v12 = vld [vmem:[#allocation2 + $0x6d0] sm:$0xff] }
 0x1bd   :  { %3625 = vmatprep.subr.bf16.mxu0 %v4898_v28  ;;  %3789 = vmatprep.subr.bf16.mxu1 %v4900_v29  ;;  %v330_v28 = vld [vmem:[#allocation2 + $0x6f0] sm:$0xff]  ;;  %v327_v29 = vld [vmem:[#allocation2 + $0x6d8] sm:$0xff] }
 0x1be   :  { %v4962_v33 = vcombine.high %v326_v12, %v330_v28  ;;  %v4961_v40 = vcombine.low %v326_v12, %v330_v28  ;;  %v4963_v41 = vcombine.low %v327_v29, %v331_v30  ;;  %v387_v12 = vld [vmem:[#allocation2 + $0x8b8] sm:$0xff] }
 0x1c0   :  { %3626 = vmatpush1.bf16.msra.mxu0 %v4897_v15  ;;  %3790 = vmatpush1.bf16.msra.mxu1 %v4899_v35  ;;  %v4964_v15 = vcombine.high %v327_v29, %v331_v30  ;;  %v334_v35 = vld [vmem:[#allocation2 + $0x710] sm:$0xff] }
 0x1c1   :  { %3627 = vmatprep.subr.bf16.mxu0 %v4906_v37  ;;  %3791 = vmatprep.subr.bf16.mxu1 %v4908_v23  ;;  %v338_v37 = vld [vmem:[#allocation2 + $0x730] sm:$0xff]  ;;  %v335_v23 = vld [vmem:[#allocation2 + $0x718] sm:$0xff] }
 0x1c2   :  { %v4970_v42 = vcombine.high %v334_v35, %v338_v37  ;;  %v4969_v48 = vcombine.low %v334_v35, %v338_v37  ;;  %v4971_v49 = vcombine.low %v335_v23, %v339_v38  ;;  %v395_v35 = vld [vmem:[#allocation2 + $0x8f8] sm:$0xff] }
 0x1c4   :  { %3628 = vmatpush1.bf16.msra.mxu0 %v4905_v43  ;;  %3792 = vmatpush1.bf16.msra.mxu1 %v4907_v44  ;;  %v4972_v43 = vcombine.high %v335_v23, %v339_v38  ;;  %v342_v44 = vld [vmem:[#allocation2 + $0x750] sm:$0xff] }
 0x1c5   :  { %3629 = vmatprep.subr.bf16.mxu0 %v4914_v45  ;;  %3793 = vmatprep.subr.bf16.mxu1 %v4916_v46  ;;  %v346_v45 = vld [vmem:[#allocation2 + $0x770] sm:$0xff]  ;;  %v343_v46 = vld [vmem:[#allocation2 + $0x758] sm:$0xff] }
 0x1c6   :  { %v4978_v50 = vcombine.high %v342_v44, %v346_v45  ;;  %v4977_v59 = vcombine.low %v342_v44, %v346_v45  ;;  %v4979_v60 = vcombine.low %v343_v46, %v347_v47 }
 0x1c8   :  { %3630 = vmatpush1.bf16.msra.mxu0 %v4913_v51  ;;  %3794 = vmatpush1.bf16.msra.mxu1 %v4915_v52  ;;  %v4980_v51 = vcombine.high %v343_v46, %v347_v47  ;;  %v350_v52 = vld [vmem:[#allocation2 + $0x790] sm:$0xff] }
 0x1c9   :  { %3631 = vmatprep.subr.bf16.mxu0 %v4922_v54  ;;  %3795 = vmatprep.subr.bf16.mxu1 %v4924_v56  ;;  %v354_v54 = vld [vmem:[#allocation2 + $0x7b0] sm:$0xff]  ;;  %v351_v56 = vld [vmem:[#allocation2 + $0x798] sm:$0xff] }
 0x1ca   :  { %v4986_v61 = vcombine.high %v350_v52, %v354_v54  ;;  %v4985_v39 = vcombine.low %v350_v52, %v354_v54  ;;  %v4987_v3 = vcombine.low %v351_v56, %v355_v58  ;;  %v406_v47 = vld [vmem:[#allocation2 + $0x950] sm:$0xff] }
 0x1cc   :  { %3632 = vmatpush1.bf16.msra.mxu0 %v4921_v62  ;;  %3796 = vmatpush1.bf16.msra.mxu1 %v4923_v63  ;;  %v4988_v62 = vcombine.high %v351_v56, %v355_v58  ;;  %v358_v63 = vld [vmem:[#allocation2 + $0x7d0] sm:$0xff] }
 0x1cd   :  { %3633 = vmatprep.subr.bf16.mxu0 %v4930_v0  ;;  %3797 = vmatprep.subr.bf16.mxu1 %v4932_v1  ;;  %v362_v0 = vld [vmem:[#allocation2 + $0x7f0] sm:$0xff]  ;;  %v359_v1 = vld [vmem:[#allocation2 + $0x7d8] sm:$0xff] }
 0x1ce   :  { %v4994_v4 = vcombine.high %v358_v63, %v362_v0  ;;  %v4993_v10 = vcombine.low %v358_v63, %v362_v0  ;;  %v4995_v11 = vcombine.low %v359_v1, %v363_v2  ;;  %v414_v58 = vld [vmem:[#allocation2 + $0x990] sm:$0xff] }
 0x1d0   :  { %3634 = vmatpush1.bf16.msra.mxu0 %v4929_v5  ;;  %3798 = vmatpush1.bf16.msra.mxu1 %v4931_v6  ;;  %v4996_v5 = vcombine.high %v359_v1, %v363_v2  ;;  %v366_v6 = vld [vmem:[#allocation2 + $0x810] sm:$0xff] }
 0x1d1   :  { %3635 = vmatprep.subr.bf16.mxu0 %v4938_v7  ;;  %3799 = vmatprep.subr.bf16.mxu1 %v4940_v8  ;;  %v370_v7 = vld [vmem:[#allocation2 + $0x830] sm:$0xff]  ;;  %v367_v8 = vld [vmem:[#allocation2 + $0x818] sm:$0xff] }
 0x1d2   :  { %v5002_v13 = vcombine.high %v366_v6, %v370_v7  ;;  %v5001_v20 = vcombine.low %v366_v6, %v370_v7  ;;  %v5003_v21 = vcombine.low %v367_v8, %v371_v9  ;;  %v422_v2 = vld [vmem:[#allocation2 + $0x9d0] sm:$0xff] }
 0x1d4   :  { %3636 = vmatpush1.bf16.msra.mxu0 %v4937_v14  ;;  %3800 = vmatpush1.bf16.msra.mxu1 %v4939_v16  ;;  %v5004_v14 = vcombine.high %v367_v8, %v371_v9  ;;  %v374_v16 = vld [vmem:[#allocation2 + $0x850] sm:$0xff] }
 0x1d5   :  { %3637 = vmatprep.subr.bf16.mxu0 %v4946_v17  ;;  %3801 = vmatprep.subr.bf16.mxu1 %v4948_v18  ;;  %v378_v17 = vld [vmem:[#allocation2 + $0x870] sm:$0xff]  ;;  %v375_v18 = vld [vmem:[#allocation2 + $0x858] sm:$0xff] }
 0x1d6   :  { %v5010_v22 = vcombine.high %v374_v16, %v378_v17  ;;  %v5009_v28 = vcombine.low %v374_v16, %v378_v17  ;;  %v5011_v29 = vcombine.low %v375_v18, %v379_v19  ;;  %v430_v9 = vld [vmem:[#allocation2 + $0xa10] sm:$0xff] }
 0x1d8   :  { %3638 = vmatpush1.bf16.msra.mxu0 %v4945_v57  ;;  %3802 = vmatpush1.bf16.msra.mxu1 %v4947_v53  ;;  %v5012_v57 = vcombine.high %v375_v18, %v379_v19  ;;  %v382_v53 = vld [vmem:[#allocation2 + $0x890] sm:$0xff] }
 0x1d9   :  { %3639 = vmatprep.subr.bf16.mxu0 %v4954_v26  ;;  %3803 = vmatprep.subr.bf16.mxu1 %v4956_v27  ;;  %v386_v26 = vld [vmem:[#allocation2 + $0x8b0] sm:$0xff]  ;;  %v383_v27 = vld [vmem:[#allocation2 + $0x898] sm:$0xff] }
 0x1da   :  { %v5018_v30 = vcombine.high %v382_v53, %v386_v26  ;;  %v5017_v37 = vcombine.low %v382_v53, %v386_v26  ;;  %v438_v19 = vld [vmem:[#allocation2 + $0xa50] sm:$0xff] }
 0x1dc   :  { %3640 = vmatpush1.bf16.msra.mxu0 %v4953_v31  ;;  %3804 = vmatpush1.bf16.msra.mxu1 %v4955_v32  ;;  %v5020_v31 = vcombine.high %v383_v27, %v387_v12  ;;  %v390_v32 = vld [vmem:[#allocation2 + $0x8d0] sm:$0xff] }
 0x1dd   :  { %3641 = vmatprep.subr.bf16.mxu0 %v4962_v33  ;;  %3805 = vmatprep.subr.bf16.mxu1 %v4964_v15  ;;  %v394_v33 = vld [vmem:[#allocation2 + $0x8f0] sm:$0xff]  ;;  %v391_v15 = vld [vmem:[#allocation2 + $0x8d8] sm:$0xff] }
 0x1de   :  { %v5026_v23 = vcombine.high %v390_v32, %v394_v33  ;;  %v5028_v38 = vcombine.high %v391_v15, %v395_v35  ;;  %v5025_v44 = vcombine.low %v390_v32, %v394_v33  ;;  %v5027_v45 = vcombine.low %v391_v15, %v395_v35  ;;  %v454_v35 = vld [vmem:[#allocation2 + $0xad0] sm:$0xff] }
 0x1e0   :  { %3642 = vmatpush1.bf16.msra.mxu0 %v4961_v40  ;;  %3806 = vmatpush1.bf16.msra.mxu1 %v4963_v41  ;;  %v398_v40 = vld [vmem:[#allocation2 + $0x910] sm:$0xff] }
 0x1e1   :  { %3643 = vmatprep.subr.bf16.mxu0 %v4970_v42  ;;  %3807 = vmatprep.subr.bf16.mxu1 %v4972_v43  ;;  %v402_v41 = vld [vmem:[#allocation2 + $0x930] sm:$0xff]  ;;  %v399_v42 = vld [vmem:[#allocation2 + $0x918] sm:$0xff] }
 0x1e2   :  { %v403_v43 = vld [vmem:[#allocation2 + $0x938] sm:$0xff]  ;;  %v5034_v46 = vcombine.high %v398_v40, %v402_v41 }
 0x1e3   :  { %v5035_v52 = vcombine.low %v399_v42, %v403_v43 }
 0x1e4   :  { %3644 = vmatpush1.bf16.msra.mxu0 %v4969_v48  ;;  %3808 = vmatpush1.bf16.msra.mxu1 %v4971_v49  ;;  %v410_v48 = vld [vmem:[#allocation2 + $0x970] sm:$0xff]  ;;  %v407_v49 = vld [vmem:[#allocation2 + $0x958] sm:$0xff] }
 0x1e5   :  { %3645 = vmatprep.subr.bf16.mxu0 %v4978_v50  ;;  %3809 = vmatprep.subr.bf16.mxu1 %v4980_v51  ;;  %v411_v50 = vld [vmem:[#allocation2 + $0x978] sm:$0xff]  ;;  %v5033_v51 = vcombine.low %v398_v40, %v402_v41  ;;  %v5042_v54 = vcombine.high %v406_v47, %v410_v48 }
 0x1e6   :  { %v5044_v56 = vcombine.high %v407_v49, %v411_v50  ;;  %v5043_v63 = vcombine.low %v407_v49, %v411_v50  ;;  %v470_v50 = vld [vmem:[#allocation2 + $0xb50] sm:$0xff] }
 0x1e8   :  { %3646 = vmatpush1.bf16.msra.mxu0 %v4977_v59  ;;  %3810 = vmatpush1.bf16.msra.mxu1 %v4979_v60  ;;  %v418_v59 = vld [vmem:[#allocation2 + $0x9b0] sm:$0xff]  ;;  %v415_v60 = vld [vmem:[#allocation2 + $0x998] sm:$0xff] }
 0x1e9   :  { %3647 = vmatprep.subr.bf16.mxu0 %v4986_v61  ;;  %3811 = vmatprep.subr.bf16.mxu1 %v4988_v62  ;;  %v419_v61 = vld [vmem:[#allocation2 + $0x9b8] sm:$0xff]  ;;  %v5041_v62 = vcombine.low %v406_v47, %v410_v48  ;;  %v5050_v0 = vcombine.high %v414_v58, %v418_v59 }
 0x1ea   :  { %v5052_v1 = vcombine.high %v415_v60, %v419_v61  ;;  %v5051_v6 = vcombine.low %v415_v60, %v419_v61  ;;  %v478_v61 = vld [vmem:[#allocation2 + $0xb90] sm:$0xff] }
 0x1ec   :  { %3648 = vmatpush1.bf16.msra.mxu0 %v4985_v39  ;;  %3812 = vmatpush1.bf16.msra.mxu1 %v4987_v3  ;;  %v426_v39 = vld [vmem:[#allocation2 + $0x9f0] sm:$0xff]  ;;  %v423_v3 = vld [vmem:[#allocation2 + $0x9d8] sm:$0xff] }
 0x1ed   :  { %3649 = vmatprep.subr.bf16.mxu0 %v4994_v4  ;;  %3813 = vmatprep.subr.bf16.mxu1 %v4996_v5  ;;  %v427_v4 = vld [vmem:[#allocation2 + $0x9f8] sm:$0xff]  ;;  %v5049_v5 = vcombine.low %v414_v58, %v418_v59  ;;  %v5058_v7 = vcombine.high %v422_v2, %v426_v39 }
 0x1ee   :  { %v5060_v8 = vcombine.high %v423_v3, %v427_v4  ;;  %v5059_v16 = vcombine.low %v423_v3, %v427_v4  ;;  %v486_v4 = vld [vmem:[#allocation2 + $0xbd0] sm:$0xff] }
 0x1f0   :  { %3650 = vmatpush1.bf16.msra.mxu0 %v4993_v10  ;;  %3814 = vmatpush1.bf16.msra.mxu1 %v4995_v11  ;;  %v434_v10 = vld [vmem:[#allocation2 + $0xa30] sm:$0xff]  ;;  %v431_v11 = vld [vmem:[#allocation2 + $0xa18] sm:$0xff] }
 0x1f1   :  { %3660 = vmatprep.subr.bf16.mxu0 %v5002_v13  ;;  %3824 = vmatprep.subr.bf16.mxu1 %v5004_v14  ;;  %v435_v13 = vld [vmem:[#allocation2 + $0xa38] sm:$0xff]  ;;  %v5057_v14 = vcombine.low %v422_v2, %v426_v39  ;;  %v5066_v17 = vcombine.high %v430_v9, %v434_v10 }
 0x1f2   :  { %v5068_v18 = vcombine.high %v431_v11, %v435_v13  ;;  %v5067_v53 = vcombine.low %v431_v11, %v435_v13  ;;  %v494_v13 = vld [vmem:[#allocation2 + $0xc10] sm:$0xff] }
 0x1f3   :  { %3652 = vmatmul.mubr.bf16.vlgmr.msra.gmra.mrb[4].mxu0 %v5933_v25  ;;  %3816 = vmatmul.mubr.bf16.vlgmr.msra.gmra.mrb[4].mxu1 %v5933_v25  ;;  %v5019_v25 = vcombine.low %v383_v27, %v387_v12  ;;  %v446_v12 = vld [vmem:[#allocation2 + $0xa90] sm:$0xff] }
 0x1f4   :  { %3661 = vmatpush1.bf16.msra.mxu0 %v5001_v20  ;;  %3825 = vmatpush1.bf16.msra.mxu1 %v5003_v21  ;;  %v442_v20 = vld [vmem:[#allocation2 + $0xa70] sm:$0xff]  ;;  %v439_v21 = vld [vmem:[#allocation2 + $0xa58] sm:$0xff] }
 0x1f5   :  { %3662 = vmatprep.subr.bf16.mxu0 %v5010_v22  ;;  %3826 = vmatprep.subr.bf16.mxu1 %v5012_v57  ;;  %v443_v22 = vld [vmem:[#allocation2 + $0xa78] sm:$0xff]  ;;  %v5065_v57 = vcombine.low %v430_v9, %v434_v10  ;;  %v5074_v26 = vcombine.high %v438_v19, %v442_v20 }
 0x1f6   :  { %3692 = vmatprep.mubr.bf16.mxu0 %v5937_v34  ;;  %3856 = vmatprep.mubr.bf16.mxu1 %v5937_v34  ;;  %v5036_v34 = vcombine.high %v399_v42, %v403_v43  ;;  %v5076_v27 = vcombine.high %v439_v21, %v443_v22  ;;  %v5075_v32 = vcombine.low %v439_v21, %v443_v22  ;;  %v462_v43 = vld [vmem:[#allocation2 + $0xb10] sm:$0xff] }
 0x1f7   :  { %v502_v22 = vld [vmem:[#allocation2 + $0xc50] sm:$0xff] }
 0x1f8   :  { %3663 = vmatpush1.bf16.msra.mxu0 %v5009_v28  ;;  %3827 = vmatpush1.bf16.msra.mxu1 %v5011_v29  ;;  %v450_v28 = vld [vmem:[#allocation2 + $0xab0] sm:$0xff]  ;;  %v447_v29 = vld [vmem:[#allocation2 + $0xa98] sm:$0xff] }
 0x1f9   :  { %3664 = vmatprep.subr.bf16.mxu0 %v5018_v30  ;;  %3828 = vmatprep.subr.bf16.mxu1 %v5020_v31  ;;  %v451_v30 = vld [vmem:[#allocation2 + $0xab8] sm:$0xff]  ;;  %v5073_v31 = vcombine.low %v438_v19, %v442_v20  ;;  %v5082_v33 = vcombine.high %v446_v12, %v450_v28 }
 0x1fa   :  { %v5084_v15 = vcombine.high %v447_v29, %v451_v30  ;;  %v5083_v40 = vcombine.low %v447_v29, %v451_v30  ;;  %v510_v30 = vld [vmem:[#allocation2 + $0xc90] sm:$0xff] }
 0x1fc   :  { %3665 = vmatpush1.bf16.msra.mxu0 %v5017_v37  ;;  %3829 = vmatpush1.bf16.msra.mxu1 %v5019_v25  ;;  %v458_v37 = vld [vmem:[#allocation2 + $0xaf0] sm:$0xff]  ;;  %v455_v25 = vld [vmem:[#allocation2 + $0xad8] sm:$0xff] }
 0x1fd   :  { %3666 = vmatprep.subr.bf16.mxu0 %v5026_v23  ;;  %3830 = vmatprep.subr.bf16.mxu1 %v5028_v38  ;;  %v459_v23 = vld [vmem:[#allocation2 + $0xaf8] sm:$0xff]  ;;  %v5081_v38 = vcombine.low %v446_v12, %v450_v28  ;;  %v5090_v41 = vcombine.high %v454_v35, %v458_v37 }
 0x1fe   :  { %v5092_v42 = vcombine.high %v455_v25, %v459_v23  ;;  %v5091_v47 = vcombine.low %v455_v25, %v459_v23  ;;  %v518_v23 = vld [vmem:[#allocation2 + $0xcd0] sm:$0xff] }
 0x200   :  { %3667 = vmatpush1.bf16.msra.mxu0 %v5025_v44  ;;  %3831 = vmatpush1.bf16.msra.mxu1 %v5027_v45  ;;  %v466_v44 = vld [vmem:[#allocation2 + $0xb30] sm:$0xff]  ;;  %v463_v45 = vld [vmem:[#allocation2 + $0xb18] sm:$0xff] }
 0x201   :  { %3668 = vmatprep.subr.bf16.mxu0 %v5034_v46  ;;  %3832 = vmatprep.subr.bf16.mxu1 %v5036_v34  ;;  %v467_v46 = vld [vmem:[#allocation2 + $0xb38] sm:$0xff]  ;;  %v5089_v34 = vcombine.low %v454_v35, %v458_v37  ;;  %v5098_v48 = vcombine.high %v462_v43, %v466_v44 }
 0x202   :  { %v5100_v49 = vcombine.high %v463_v45, %v467_v46  ;;  %v5099_v58 = vcombine.low %v463_v45, %v467_v46  ;;  %v526_v45 = vld [vmem:[#allocation2 + $0xd10] sm:$0xff] }
 0x203   :  { %v530_v46 = vld [vmem:[#allocation2 + $0xd30] sm:$0xff] }
 0x204   :  { %3669 = vmatpush1.bf16.msra.mxu0 %v5033_v51  ;;  %3833 = vmatpush1.bf16.msra.mxu1 %v5035_v52  ;;  %v474_v51 = vld [vmem:[#allocation2 + $0xb70] sm:$0xff]  ;;  %v471_v52 = vld [vmem:[#allocation2 + $0xb58] sm:$0xff] }
 0x205   :  { %3670 = vmatprep.subr.bf16.mxu0 %v5042_v54  ;;  %3834 = vmatprep.subr.bf16.mxu1 %v5044_v56  ;;  %v475_v54 = vld [vmem:[#allocation2 + $0xb78] sm:$0xff]  ;;  %v5097_v56 = vcombine.low %v462_v43, %v466_v44  ;;  %v5106_v59 = vcombine.high %v470_v50, %v474_v51 }
 0x206   :  { %v5108_v60 = vcombine.high %v471_v52, %v475_v54  ;;  %v5107_v2 = vcombine.low %v471_v52, %v475_v54  ;;  %v538_v52 = vld [vmem:[#allocation2 + $0xd70] sm:$0xff]  ;;  %v535_v54 = vld [vmem:[#allocation2 + $0xd58] sm:$0xff] }
 0x208   :  { %3671 = vmatpush1.bf16.msra.mxu0 %v5041_v62  ;;  %3835 = vmatpush1.bf16.msra.mxu1 %v5043_v63  ;;  %v482_v62 = vld [vmem:[#allocation2 + $0xbb0] sm:$0xff]  ;;  %v479_v63 = vld [vmem:[#allocation2 + $0xb98] sm:$0xff] }
 0x209   :  { %3672 = vmatprep.subr.bf16.mxu0 %v5050_v0  ;;  %3836 = vmatprep.subr.bf16.mxu1 %v5052_v1  ;;  %v483_v0 = vld [vmem:[#allocation2 + $0xbb8] sm:$0xff]  ;;  %v5105_v1 = vcombine.low %v470_v50, %v474_v51  ;;  %v5114_v39 = vcombine.high %v478_v61, %v482_v62  ;;  %v5162_v50 = vcombine.high %v526_v45, %v530_v46  ;;  %v534_v51 = vld [vmem:[#allocation2 + $0xd50] sm:$0xff] }
 0x20a   :  { %v5116_v3 = vcombine.high %v479_v63, %v483_v0  ;;  %v5115_v9 = vcombine.low %v479_v63, %v483_v0  ;;  %v546_v63 = vld [vmem:[#allocation2 + $0xdb0] sm:$0xff]  ;;  %v543_v0 = vld [vmem:[#allocation2 + $0xd98] sm:$0xff] }
 0x20c   :  { %3673 = vmatpush1.bf16.msra.mxu0 %v5049_v5  ;;  %3837 = vmatpush1.bf16.msra.mxu1 %v5051_v6  ;;  %v490_v5 = vld [vmem:[#allocation2 + $0xbf0] sm:$0xff]  ;;  %v487_v6 = vld [vmem:[#allocation2 + $0xbd8] sm:$0xff] }
 0x20d   :  { %3674 = vmatprep.subr.bf16.mxu0 %v5058_v7  ;;  %3838 = vmatprep.subr.bf16.mxu1 %v5060_v8  ;;  %v491_v7 = vld [vmem:[#allocation2 + $0xbf8] sm:$0xff]  ;;  %v5113_v8 = vcombine.low %v478_v61, %v482_v62  ;;  %v5122_v10 = vcombine.high %v486_v4, %v490_v5  ;;  %v542_v62 = vld [vmem:[#allocation2 + $0xd90] sm:$0xff] }
 0x20e   :  { %v5124_v11 = vcombine.high %v487_v6, %v491_v7  ;;  %v5123_v19 = vcombine.low %v487_v6, %v491_v7  ;;  %v550_v6 = vld [vmem:[#allocation2 + $0xdd0] sm:$0xff] }
 0x20f   :  { %v554_v7 = vld [vmem:[#allocation2 + $0xdf0] sm:$0xff] }
 0x210   :  { %3675 = vmatpush1.bf16.msra.mxu0 %v5057_v14  ;;  %3839 = vmatpush1.bf16.msra.mxu1 %v5059_v16  ;;  %v498_v14 = vld [vmem:[#allocation2 + $0xc30] sm:$0xff]  ;;  %v495_v16 = vld [vmem:[#allocation2 + $0xc18] sm:$0xff] }
 0x211   :  { %3676 = vmatprep.subr.bf16.mxu0 %v5066_v17  ;;  %3840 = vmatprep.subr.bf16.mxu1 %v5068_v18  ;;  %v499_v17 = vld [vmem:[#allocation2 + $0xc38] sm:$0xff]  ;;  %v5121_v18 = vcombine.low %v486_v4, %v490_v5  ;;  %v5130_v20 = vcombine.high %v494_v13, %v498_v14 }
 0x212   :  { %v5132_v21 = vcombine.high %v495_v16, %v499_v17  ;;  %v5131_v12 = vcombine.low %v495_v16, %v499_v17  ;;  %v5177_v16 = vcombine.low %v542_v62, %v546_v63 }
 0x214   :  { %3677 = vmatpush1.bf16.msra.mxu0 %v5065_v57  ;;  %3841 = vmatpush1.bf16.msra.mxu1 %v5067_v53  ;;  %v506_v57 = vld [vmem:[#allocation2 + $0xc70] sm:$0xff]  ;;  %v503_v53 = vld [vmem:[#allocation2 + $0xc58] sm:$0xff] }
 0x215   :  { %3678 = vmatprep.subr.bf16.mxu0 %v5074_v26  ;;  %3842 = vmatprep.subr.bf16.mxu1 %v5076_v27  ;;  %v507_v26 = vld [vmem:[#allocation2 + $0xc78] sm:$0xff]  ;;  %v5129_v27 = vcombine.low %v494_v13, %v498_v14  ;;  %v5138_v28 = vcombine.high %v502_v22, %v506_v57 }
 0x216   :  { %v5140_v29 = vcombine.high %v503_v53, %v507_v26  ;;  %v5139_v35 = vcombine.low %v503_v53, %v507_v26  ;;  %v562_v53 = vld [vmem:[#allocation2 + $0xe30] sm:$0xff]  ;;  %v559_v26 = vld [vmem:[#allocation2 + $0xe18] sm:$0xff] }
 0x218   :  { %3679 = vmatpush1.bf16.msra.mxu0 %v5073_v31  ;;  %3843 = vmatpush1.bf16.msra.mxu1 %v5075_v32  ;;  %v514_v31 = vld [vmem:[#allocation2 + $0xcb0] sm:$0xff]  ;;  %v511_v32 = vld [vmem:[#allocation2 + $0xc98] sm:$0xff] }
 0x219   :  { %3680 = vmatprep.subr.bf16.mxu0 %v5082_v33  ;;  %3844 = vmatprep.subr.bf16.mxu1 %v5084_v15  ;;  %v515_v33 = vld [vmem:[#allocation2 + $0xcb8] sm:$0xff]  ;;  %v5137_v15 = vcombine.low %v502_v22, %v506_v57  ;;  %v5146_v37 = vcombine.high %v510_v30, %v514_v31  ;;  %v558_v57 = vld [vmem:[#allocation2 + $0xe10] sm:$0xff] }
 0x21a   :  { %v5148_v25 = vcombine.high %v511_v32, %v515_v33 }
 0x21c   :  { %3681 = vmatpush1.bf16.msra.mxu0 %v5081_v38  ;;  %3845 = vmatpush1.bf16.msra.mxu1 %v5083_v40  ;;  %v522_v38 = vld [vmem:[#allocation2 + $0xcf0] sm:$0xff]  ;;  %v519_v40 = vld [vmem:[#allocation2 + $0xcd8] sm:$0xff] }
 0x21d   :  { %3682 = vmatprep.subr.bf16.mxu0 %v5090_v41  ;;  %3846 = vmatprep.subr.bf16.mxu1 %v5092_v42  ;;  %v523_v41 = vld [vmem:[#allocation2 + $0xcf8] sm:$0xff]  ;;  %v5145_v42 = vcombine.low %v510_v30, %v514_v31  ;;  %v5154_v43 = vcombine.high %v518_v23, %v522_v38  ;;  %v566_v31 = vld [vmem:[#allocation2 + $0xe50] sm:$0xff] }
 0x21e   :  { %v5156_v44 = vcombine.high %v519_v40, %v523_v41 }
 0x220   :  { %3683 = vmatpush1.bf16.msra.mxu0 %v5089_v34  ;;  %3847 = vmatpush1.bf16.msra.mxu1 %v5091_v47  ;;  %v527_v34 = vld [vmem:[#allocation2 + $0xd18] sm:$0xff] }
 0x221   :  { %3684 = vmatprep.subr.bf16.mxu0 %v5098_v48  ;;  %3848 = vmatprep.subr.bf16.mxu1 %v5100_v49  ;;  %v531_v47 = vld [vmem:[#allocation2 + $0xd38] sm:$0xff]  ;;  %v5153_v48 = vcombine.low %v518_v23, %v522_v38  ;;  %v5155_v49 = vcombine.low %v519_v40, %v523_v41  ;;  %v622_v23 = vlaneseq  ;;  %v574_v40 = vld [vmem:[#allocation2 + $0xe90] sm:$0xff] }
 0x222   :  { %v578_v41 = vld [vmem:[#allocation2 + $0xeb0] sm:$0xff] }
 0x224   :  { %3685 = vmatpush1.bf16.msra.mxu0 %v5097_v56  ;;  %3849 = vmatpush1.bf16.msra.mxu1 %v5099_v58  ;;  %v539_v56 = vld [vmem:[#allocation2 + $0xd78] sm:$0xff]  ;;  %v5161_v58 = vcombine.low %v526_v45, %v530_v46  ;;  %v5210_v45 = vcombine.high %v574_v40, %v578_v41  ;;  %v5988_v46 = vshrl.u32 %v622_v23, 7  ;;  %v5522_v23 = vld [vmem:[#allocation7 + $0xc0] sm:$0xff]  }
 0x225   :  { %3686 = vmatprep.subr.bf16.mxu0 %v5106_v59  ;;  %3850 = vmatprep.subr.bf16.mxu1 %v5108_v60  ;;  %v5163_v59 = vcombine.low %v527_v34, %v531_v47  ;;  %v5170_v60 = vcombine.high %v534_v51, %v538_v52  ;;  %v5172_v61 = vcombine.high %v535_v54, %v539_v56 }
 0x228   :  { %3687 = vmatpush1.bf16.msra.mxu0 %v5105_v1  ;;  %3851 = vmatpush1.bf16.msra.mxu1 %v5107_v2  ;;  %v547_v1 = vld [vmem:[#allocation2 + $0xdb8] sm:$0xff]  ;;  %v5169_v2 = vcombine.low %v534_v51, %v538_v52 }
 0x229   :  { %3688 = vmatprep.subr.bf16.mxu0 %v5114_v39  ;;  %3852 = vmatprep.subr.bf16.mxu1 %v5116_v3  ;;  %v5171_v39 = vcombine.low %v535_v54, %v539_v56  ;;  %v5178_v3 = vcombine.high %v542_v62, %v546_v63  ;;  %v5180_v5 = vcombine.high %v543_v0, %v547_v1  ;;  %v628_v54 = vsub.s32 1, %v5988_v46  ;;  %v591_v62 = vld [vmem:[#allocation2 + $0xf18] sm:$0xff] }
 0x22a   :  { %v595_v63 = vld [vmem:[#allocation2 + $0xf38] sm:$0xff] }
 0x22c   :  { %3689 = vmatpush1.bf16.msra.mxu0 %v5113_v8  ;;  %3853 = vmatpush1.bf16.msra.mxu1 %v5115_v9 }
 0x22d   :  { %3690 = vmatprep.subr.bf16.mxu0 %v5122_v10  ;;  %3854 = vmatprep.subr.bf16.mxu1 %v5124_v11  ;;  %v551_v10 = vld [vmem:[#allocation2 + $0xdd8] sm:$0xff] }
 0x22e   :  { %v555_v11 = vld [vmem:[#allocation2 + $0xdf8] sm:$0xff] }
 0x22f   :  { %v5188_v22 = vcombine.high %v551_v10, %v555_v11 }
 0x230   :  { %3691 = vmatpush1.bf16.msra.mxu0 %v5121_v18  ;;  %3855 = vmatpush1.bf16.msra.mxu1 %v5123_v19  ;;  %v5179_v19 = vcombine.low %v543_v0, %v547_v1 }
 0x231   :  { %3701 = vmatprep.subr.bf16.mxu0 %v5130_v20  ;;  %3865 = vmatprep.subr.bf16.mxu1 %v5132_v21  ;;  %v5186_v20 = vcombine.high %v550_v6, %v554_v7 }
 0x233   :  { %3693 = vmatmul.mubr.bf16.vlgmr.msra.gmra.mrb[4].mxu0 %v5945_v36  ;;  %3857 = vmatmul.mubr.bf16.vlgmr.msra.gmra.mrb[4].mxu1 %v5945_v36  ;;  %v5147_v36 = vcombine.low %v511_v32, %v515_v33  ;;  %v570_v32 = vld [vmem:[#allocation2 + $0xe70] sm:$0xff]  ;;  %v567_v33 = vld [vmem:[#allocation2 + $0xe58] sm:$0xff] }
 0x234   :  { %3702 = vmatpush1.bf16.msra.mxu0 %v5129_v27  ;;  %3866 = vmatpush1.bf16.msra.mxu1 %v5131_v12  ;;  %v563_v27 = vld [vmem:[#allocation2 + $0xe38] sm:$0xff]  ;;  %v5185_v12 = vcombine.low %v550_v6, %v554_v7  ;;  %v602_v6 = vld [vmem:[#allocation2 + $0xf70] sm:$0xff] }
 0x235   :  { %3703 = vmatprep.subr.bf16.mxu0 %v5138_v28  ;;  %3867 = vmatprep.subr.bf16.mxu1 %v5140_v29  ;;  %v5187_v28 = vcombine.low %v551_v10, %v555_v11  ;;  %v5194_v29 = vcombine.high %v558_v57, %v562_v53  ;;  %v5196_v30 = vcombine.high %v559_v26, %v563_v27  ;;  %v599_v10 = vld [vmem:[#allocation2 + $0xf58] sm:$0xff] }
 0x236   :  { %3733 = vmatprep.mubr.bf16.mxu0 %v5954_v24  ;;  %3897 = vmatprep.mubr.bf16.mxu1 %v5954_v24  ;;  %v5164_v24 = vcombine.high %v527_v34, %v531_v47  ;;  %v582_v47 = vld [vmem:[#allocation2 + $0xed0] sm:$0xff]  ;;  %v603_v11 = vld [vmem:[#allocation2 + $0xf78] sm:$0xff] }
 0x238   :  { %3704 = vmatpush1.bf16.msra.mxu0 %v5137_v15  ;;  %3868 = vmatpush1.bf16.msra.mxu1 %v5139_v35  ;;  %v571_v15 = vld [vmem:[#allocation2 + $0xe78] sm:$0xff]  ;;  %v5193_v35 = vcombine.low %v558_v57, %v562_v53 }
 0x239   :  { %3705 = vmatprep.subr.bf16.mxu0 %v5146_v37  ;;  %3869 = vmatprep.subr.bf16.mxu1 %v5148_v25  ;;  %v5195_v37 = vcombine.low %v559_v26, %v563_v27  ;;  %v5202_v25 = vcombine.high %v566_v31, %v570_v32  ;;  %v5204_v38 = vcombine.high %v567_v33, %v571_v15  ;;  %v607_v57 = vld [vmem:[#allocation2 + $0xf98] sm:$0xff] }
 0x23a   :  { %v611_v53 = vld [vmem:[#allocation2 + $0xfb8] sm:$0xff]  ;;  %v5235_v27 = vcombine.low %v599_v10, %v603_v11 }
 0x23c   :  { %3706 = vmatpush1.bf16.msra.mxu0 %v5145_v42  ;;  %3870 = vmatpush1.bf16.msra.mxu1 %v5147_v36  ;;  %v575_v42 = vld [vmem:[#allocation2 + $0xe98] sm:$0xff] }
 0x23d   :  { %3707 = vmatprep.subr.bf16.mxu0 %v5154_v43  ;;  %3871 = vmatprep.subr.bf16.mxu1 %v5156_v44  ;;  %v579_v36 = vld [vmem:[#allocation2 + $0xeb8] sm:$0xff]  ;;  %v5201_v43 = vcombine.low %v566_v31, %v570_v32  ;;  %v5203_v44 = vcombine.low %v567_v33, %v571_v15 }
 0x23e   :  { %v5212_v34 = vcombine.high %v575_v42, %v579_v36  ;;  %v5211_v51 = vcombine.low %v575_v42, %v579_v36  ;;  %v619_v31 = vld [vmem:[#allocation2 + $0xff8] sm:$0xff]  ;;  %v5524_v42 = vld [vmem:[#allocation7 + $0x80] sm:$0xff]   ;;  %v5525_v36 = vld [vmem:[#allocation7 + $0x48] sm:$0xff]  }
 0x240   :  { %3708 = vmatpush1.bf16.msra.mxu0 %v5153_v48  ;;  %3872 = vmatpush1.bf16.msra.mxu1 %v5155_v49  ;;  %v586_v48 = vld [vmem:[#allocation2 + $0xef0] sm:$0xff]  ;;  %v583_v49 = vld [vmem:[#allocation2 + $0xed8] sm:$0xff] }
 0x241   :  { %3709 = vmatprep.subr.bf16.mxu0 %v5162_v50  ;;  %3873 = vmatprep.subr.bf16.mxu1 %v5164_v24  ;;  %v587_v50 = vld [vmem:[#allocation2 + $0xef8] sm:$0xff]  ;;  %v5209_v24 = vcombine.low %v574_v40, %v578_v41  ;;  %v5218_v52 = vcombine.high %v582_v47, %v586_v48  ;;  %v5217_v0 = vcombine.low %v582_v47, %v586_v48  ;;  %v5523_v40 = vld [vmem:[#allocation7] sm:$0xff]   ;;  %v5528_v47 = vld [vmem:[#allocation7 + $0x88] sm:$0xff]  }
 0x242   :  { %v5220_v56 = vcombine.high %v583_v49, %v587_v50  ;;  %v5219_v1 = vcombine.low %v583_v49, %v587_v50  ;;  %v5529_v48 = vld [vmem:[#allocation7 + $0x50] sm:$0xff]   ;;  %v624_v50 = vsub.s32 0, %v5988_v46 }
 0x243   :  { %v5530_v49 = vld [vmem:[#allocation7 + $0xd0] sm:$0xff]  }
 0x244   :  { %3710 = vmatpush1.bf16.msra.mxu0 %v5161_v58  ;;  %3874 = vmatpush1.bf16.msra.mxu1 %v5163_v59  ;;  %v590_v58 = vld [vmem:[#allocation2 + $0xf10] sm:$0xff] }
 0x245   :  { %3711 = vmatprep.subr.bf16.mxu0 %v5170_v60  ;;  %3875 = vmatprep.subr.bf16.mxu1 %v5172_v61  ;;  %v594_v59 = vld [vmem:[#allocation2 + $0xf30] sm:$0xff]  ;;  %v5991_v60 = vld [vmem:[#allocation5] sm:$0xff]  ;;  %v636_v61 = vsub.s32 3, %v5988_v46 }
 0x246   :  { %v5980_v4 = vpop.f32.mrb[0].mxu0  ;;  %v5982_v8 = vpop.f32.mrb[0].mxu1 }
 0x247   :  { %v5984_v9 = vpop.f32.mrb[1].mxu0  ;;  %v5986_v13 = vpop.f32.mrb[1].mxu1  ;;  %v637_v7 = vrot.slane %v5991_v60, %v636_v61  ;;  %v5536_v61 = vld [vmem:[#allocation7 + $0x98] sm:$0xff]  }
 0x248   :  { %v3411_v14 = vpop.f32.mrb[2].mxu0  ;;  %3712 = vmatpush1.bf16.msra.mxu0 %v5169_v2  ;;  %v3575_v17 = vpop.f32.mrb[2].mxu1  ;;  %3876 = vmatpush1.bf16.msra.mxu1 %v5171_v39  ;;  %v5226_v2 = vcombine.high %v590_v58, %v594_v59  ;;  %v629_v39 = vrot.slane %v5991_v60, %v628_v54  ;;  %v5534_v54 = vld [vmem:[#allocation7 + $0xd8] sm:$0xff]  }
 0x249   :  { %v3412_v18 = vpop.f32.mrb[3].mxu0  ;;  %3713 = vmatprep.subr.bf16.mxu0 %v5178_v3  ;;  %v3576_v21 = vpop.f32.mrb[3].mxu1  ;;  %3877 = vmatprep.subr.bf16.mxu1 %v5180_v5  ;;  %v5228_v3 = vcombine.high %v591_v62, %v595_v63  ;;  %v598_v5 = vld [vmem:[#allocation2 + $0xf50] sm:$0xff]  ;;  %v5225_v14 = vcombine.low %v590_v58, %v594_v59  ;;  %v5535_v58 = vld [vmem:[#allocation7 + $0x18] sm:$0xff]  }
 0x24a   :  { %v5234_v17 = vcombine.high %v598_v5, %v602_v6  ;;  %v5445_v18 = vadd.f32 %v5984_v9, %v629_v39  ;;  %v610_v21 = vld [vmem:[#allocation2 + $0xfb0] sm:$0xff]  ;;  %v5233_v26 = vcombine.low %v598_v5, %v602_v6  ;;  %v615_v9 = vld [vmem:[#allocation2 + $0xfd8] sm:$0xff]  ;;  %v5540_v39 = vld [vmem:[#allocation7 + $0xa0] sm:$0xff]  }
 0x24b   :  { %v5252_v15 = vcombine.high %v615_v9, %v619_v31  ;;  %v5542_v5 = vld [vmem:[#allocation7 + $0xe8] sm:$0xff]  }
 0x24c   :  { %3714 = vmatpush1.bf16.msra.mxu0 %v5177_v16  ;;  %3878 = vmatpush1.bf16.msra.mxu1 %v5179_v19  ;;  %v5227_v16 = vcombine.low %v591_v62, %v595_v63  ;;  %v5236_v19 = vcombine.high %v599_v10, %v603_v11  ;;  %5593 = vtanh.f32 %v5445_v18  ;;  %v5537_v62 = vld [vmem:[#allocation7 + $0x60] sm:$0xff]   ;;  %v5543_v6 = vld [vmem:[#allocation7 + $0x28] sm:$0xff]   ;;  %v5545_v10 = vld [vmem:[#allocation7 + $0x70] sm:$0xff]  }
 0x24d   :  { %3715 = vmatprep.subr.bf16.mxu0 %v5186_v20  ;;  %3879 = vmatprep.subr.bf16.mxu1 %v5188_v22  ;;  %v606_v20 = vld [vmem:[#allocation2 + $0xf90] sm:$0xff]  ;;  %v5447_v22 = vadd.f32 %v5986_v13, %v637_v7  ;;  %v5243_v13 = vcombine.low %v607_v57, %v611_v53  ;;  %v5538_v63 = vld [vmem:[#allocation7 + $0xe0] sm:$0xff]   ;;  %v5547_v11 = vld [vmem:[#allocation7 + $0x30] sm:$0xff]  }
 0x24e   :  { %v5241_v32 = vcombine.low %v606_v20, %v610_v21  ;;  %v5544_v7 = vld [vmem:[#allocation7 + $0xa8] sm:$0xff]   ;;  %v5552_v18 = vld [vmem:[#allocation7 + $0xb8] sm:$0xff]  }
 0x24f   :  { %5595 = vtanh.f32 %v5447_v22 }
 0x250   :  { %3716 = vmatpush1.bf16.msra.mxu0 %v5185_v12  ;;  %3880 = vmatpush1.bf16.msra.mxu1 %v5187_v28  ;;  %v5242_v12 = vcombine.high %v606_v20, %v610_v21  ;;  %v5244_v28 = vcombine.high %v607_v57, %v611_v53  ;;  %v5554_v21 = vld [vmem:[#allocation7 + $0x1c0] sm:$0xff]  }
 0x251   :  { %3717 = vmatprep.subr.bf16.mxu0 %v5194_v29  ;;  %3881 = vmatprep.subr.bf16.mxu1 %v5196_v30  ;;  %v614_v29 = vld [vmem:[#allocation2 + $0xfd0] sm:$0xff]  ;;  %v5555_v57 = vld [vmem:[#allocation7 + $0x100] sm:$0xff]  }
 0x252   :  { %v618_v30 = vld [vmem:[#allocation2 + $0xff0] sm:$0xff] }
 0x253   :  { %v5250_v33 = vcombine.high %v614_v29, %v618_v30 }
 0x254   :  { %3718 = vmatpush1.bf16.msra.mxu0 %v5193_v35  ;;  %3882 = vmatpush1.bf16.msra.mxu1 %v5195_v37  ;;  %v5249_v35 = vcombine.low %v614_v29, %v618_v30  ;;  %v5251_v37 = vcombine.low %v615_v9, %v619_v31  ;;  %v5559_v29 = vld [vmem:[#allocation7 + $0x108] sm:$0xff]   ;;  %v5561_v9 = vld [vmem:[#allocation7 + $0x150] sm:$0xff]  }
 0x255   :  { %3719 = vmatprep.subr.bf16.mxu0 %v5202_v25  ;;  %3883 = vmatprep.subr.bf16.mxu1 %v5204_v38  ;;  %v5521_v25 = vld [vmem:[#allocation7 + $0x40] sm:$0xff]   ;;  %v5560_v30 = vld [vmem:[#allocation7 + $0x188] sm:$0xff]   ;;  %v5562_v31 = vld [vmem:[#allocation7 + $0x1d0] sm:$0xff]  }
 0x256   :  { %v5594_v38 = vpop.eup %5593 }
 0x258   :  { %3720 = vmatpush1.bf16.msra.mxu0 %v5201_v43  ;;  %3884 = vmatpush1.bf16.msra.mxu1 %v5203_v44  ;;  %v3915_v43 = vpack.c.bf16 %v5594_v38, %v5594_v38  ;;  %v5526_v44 = vld [vmem:[#allocation7 + $0xc8] sm:$0xff]   ;;  %v5571_v38 = vld [vmem:[#allocation7 + $0x120] sm:$0xff]  }
 0x259   :  { %3721 = vmatprep.subr.bf16.mxu0 %v5210_v45  ;;  %3885 = vmatprep.subr.bf16.mxu1 %v5212_v34  ;;  %v5596_v41 = vpop.eup %5595  ;;  %v5527_v34 = vld [vmem:[#allocation7 + $0x8] sm:$0xff]  }
 0x25a   :  { %v3917_v45 = vpack.c.bf16 %v5596_v41, %v5596_v41  ;;  %v5573_v41 = vld [vmem:[#allocation7 + $0x168] sm:$0xff]  }
 0x25c   :  { %3722 = vmatpush1.bf16.msra.mxu0 %v5209_v24  ;;  %3886 = vmatpush1.bf16.msra.mxu1 %v5211_v51  ;;  %v5531_v24 = vld [vmem:[#allocation7 + $0x10] sm:$0xff]   ;;  %v632_v51 = vsub.s32 2, %v5988_v46 }
 0x25d   :  { %3723 = vmatprep.subr.bf16.mxu0 %v5218_v52  ;;  %3887 = vmatprep.subr.bf16.mxu1 %v5220_v56  ;;  %v5532_v52 = vld [vmem:[#allocation7 + $0x90] sm:$0xff]   ;;  %v625_v56 = vrot.slane %v5991_v60, %v624_v50  ;;  %v5583_v50 = vld [vmem:[#allocation7 + $0x138] sm:$0xff]  }
 0x25e   :  { %v633_v59 = vrot.slane %v5991_v60, %v632_v51  ;;  %v5783_v51 = vmov 0.0  }
 0x260   :  { %3724 = vmatpush1.bf16.msra.mxu0 %v5217_v0  ;;  %3888 = vmatpush1.bf16.msra.mxu1 %v5219_v1  ;;  %v5444_v0 = vadd.f32 %v5980_v4, %v625_v56  ;;  %v5539_v1 = vld [vmem:[#allocation7 + $0x20] sm:$0xff]   ;;  %v5546_v4 = vld [vmem:[#allocation7 + $0xf0] sm:$0xff]   ;;  %v652_v56 = vsub.s32 7, %v5988_v46 }
 0x261   :  { %3725 = vmatprep.subr.bf16.mxu0 %v5226_v2  ;;  %3889 = vmatprep.subr.bf16.mxu1 %v5228_v3  ;;  %v5446_v2 = vadd.f32 %v5982_v8, %v633_v59  ;;  %v5541_v3 = vld [vmem:[#allocation7 + $0x68] sm:$0xff]   ;;  %v5548_v8 = vld [vmem:[#allocation7 + $0xb0] sm:$0xff]  }
 0x262   :  { %5597 = vtanh.f32 %v5444_v0 }
 0x263   :  { %5599 = vtanh.f32 %v5446_v2 }
 0x264   :  { %3726 = vmatpush1.bf16.msra.mxu0 %v5225_v14  ;;  %3890 = vmatpush1.bf16.msra.mxu1 %v5227_v16  ;;  %v5549_v14 = vld [vmem:[#allocation7 + $0x78] sm:$0xff]  }
 0x265   :  { %3727 = vmatprep.subr.bf16.mxu0 %v5234_v17  ;;  %3891 = vmatprep.subr.bf16.mxu1 %v5236_v19  ;;  %v5550_v16 = vld [vmem:[#allocation7 + $0xf8] sm:$0xff]   ;;  %v5553_v19 = vld [vmem:[#allocation7 + $0x140] sm:$0xff]  }
 0x266   :  { %v5551_v17 = vld [vmem:[#allocation7 + $0x38] sm:$0xff]  }
 0x268   :  { %3728 = vmatpush1.bf16.msra.mxu0 %v5233_v26  ;;  %3892 = vmatpush1.bf16.msra.mxu1 %v5235_v27  ;;  %v5556_v26 = vld [vmem:[#allocation7 + $0x180] sm:$0xff]   ;;  %v5557_v27 = vld [vmem:[#allocation7 + $0x148] sm:$0xff]  }
 0x269   :  { %3729 = vmatprep.subr.bf16.mxu0 %v5242_v12  ;;  %3893 = vmatprep.subr.bf16.mxu1 %v5244_v28  ;;  %v5558_v28 = vld [vmem:[#allocation7 + $0x1c8] sm:$0xff]  }
 0x26c   :  { %3730 = vmatpush1.bf16.msra.mxu0 %v5241_v32  ;;  %3894 = vmatpush1.bf16.msra.mxu1 %v5243_v13  ;;  %v5598_v20 = vpop.eup %5597  ;;  %v5563_v32 = vld [vmem:[#allocation7 + $0x110] sm:$0xff]  }
 0x26d   :  { %3731 = vmatprep.subr.bf16.mxu0 %v5250_v33  ;;  %3895 = vmatprep.subr.bf16.mxu1 %v5252_v15  ;;  %v5600_v22 = vpop.eup %5599  ;;  %v3914_v53 = vpack.c.bf16 %v5598_v20, %v5598_v20  ;;  %v5564_v13 = vld [vmem:[#allocation7 + $0x190] sm:$0xff]   ;;  %v5565_v33 = vld [vmem:[#allocation7 + $0x158] sm:$0xff]  }
 0x26e   :  { %v3916_v12 = vpack.c.bf16 %v5600_v22, %v5600_v22  ;;  %v5566_v15 = vld [vmem:[#allocation7 + $0x1d8] sm:$0xff]  }
 0x26f   :  { %v5587_v22 = vld [vmem:[#allocation10 + $0x10] sm:$0xff]  }
 0x270   :  { %3732 = vmatpush1.bf16.msra.mxu0 %v5249_v35  ;;  %3896 = vmatpush1.bf16.msra.mxu1 %v5251_v37  ;;  %v5567_v35 = vld [vmem:[#allocation7 + $0x118] sm:$0xff]  }
 0x271   :  { %5327 = vmatprep.subr.bf16.mxu0 %v5521_v25  ;;  %5349 = vmatprep.subr.bf16.mxu1 %v5522_v23  ;;  %v5568_v37 = vld [vmem:[#allocation7 + $0x198] sm:$0xff]   ;;  %v5569_v25 = vld [vmem:[#allocation7 + $0x160] sm:$0xff]  }
 0x272   :  { %v5570_v23 = vld [vmem:[#allocation7 + $0x1e0] sm:$0xff]  }
 0x273   :  { %3734 = vmatmul.mubr.bf16.vlgmr.msra.gmra.mrb[4].mxu0 %v5962_v55  ;;  %3898 = vmatmul.mubr.bf16.vlgmr.msra.gmra.mrb[4].mxu1 %v5962_v55  ;;  %v5533_v55 = vld [vmem:[#allocation7 + $0x58] sm:$0xff]  }
 0x274   :  { %5328 = vmatpush3.bf16.msra.mxu0 %v5523_v40  ;;  %4473 = vmatprep.mubr.bf16.mxu0 %v3915_v43  ;;  %v5572_v40 = vld [vmem:[#allocation7 + $0x1a0] sm:$0xff]   ;;  %v5576_v43 = vld [vmem:[#allocation7 + $0x1a8] sm:$0xff]  }
 0x275   :  { %5350 = vmatpush3.bf16.msra.mxu1 %v5524_v42  ;;  %4513 = vmatprep.mubr.bf16.mxu1 %v3917_v45  ;;  %v5574_v42 = vld [vmem:[#allocation7 + $0x1e8] sm:$0xff]   ;;  %v5578_v45 = vld [vmem:[#allocation7 + $0x1f0] sm:$0xff]  }
 0x276   :  { %5329 = vmatprep.subr.bf16.mxu0 %v5525_v36  ;;  %5351 = vmatprep.subr.bf16.mxu1 %v5526_v44  ;;  %v5575_v36 = vld [vmem:[#allocation7 + $0x128] sm:$0xff]   ;;  %v5577_v44 = vld [vmem:[#allocation7 + $0x170] sm:$0xff]  }
 0x278   :  { %5330 = vmatpush3.bf16.msra.mxu0 %v5527_v34  ;;  %v5579_v34 = vld [vmem:[#allocation7 + $0x130] sm:$0xff]  }
 0x279   :  { %5352 = vmatpush3.bf16.msra.mxu1 %v5528_v47  ;;  %5331 = vmatprep.subr.bf16.mxu0 %v5529_v48  ;;  %v5580_v47 = vld [vmem:[#allocation7 + $0x1b0] sm:$0xff]   ;;  %v5581_v48 = vld [vmem:[#allocation7 + $0x178] sm:$0xff]  }
 0x27a   :  { %5353 = vmatprep.subr.bf16.mxu1 %v5530_v49  ;;  %v5582_v49 = vld [vmem:[#allocation7 + $0x1f8] sm:$0xff]  }
 0x27c   :  { %5332 = vmatpush3.bf16.msra.mxu0 %v5531_v24  ;;  %v5584_v24 = vld [vmem:[#allocation7 + $0x1b8] sm:$0xff]  }
 0x27d   :  { %5354 = vmatpush3.bf16.msra.mxu1 %v5532_v52  ;;  %5333 = vmatprep.subr.bf16.mxu0 %v5533_v55  ;;  %v640_v52 = vsub.s32 4, %v5988_v46  ;;  %v648_v55 = vsub.s32 6, %v5988_v46 }
 0x27e   :  { %5355 = vmatprep.subr.bf16.mxu1 %v5534_v54  ;;  %v644_v54 = vsub.s32 5, %v5988_v46 }
 0x27f   :  { %v649_v59 = vrot.slane %v5991_v60, %v648_v55 }
 0x280   :  { %5334 = vmatpush3.bf16.msra.mxu0 %v5535_v58  ;;  %v641_v58 = vrot.slane %v5991_v60, %v640_v52  ;;  %v5318_v52 = vld [vmem:[#allocation11] ss:$0 sm:$0xff] }
 0x281   :  { %5356 = vmatpush3.bf16.msra.mxu1 %v5536_v61  ;;  %5335 = vmatprep.subr.bf16.mxu0 %v5537_v62  ;;  %v645_v61 = vrot.slane %v5991_v60, %v644_v54  ;;  %v653_v62 = vrot.slane %v5991_v60, %v652_v56 }
 0x282   :  { %5357 = vmatprep.subr.bf16.mxu1 %v5538_v63 }
 0x284   :  { %5336 = vmatpush3.bf16.msra.mxu0 %v5539_v1 }
 0x285   :  { %5358 = vmatpush3.bf16.msra.mxu1 %v5540_v39  ;;  %5337 = vmatprep.subr.bf16.mxu0 %v5541_v3 }
 0x286   :  { %5359 = vmatprep.subr.bf16.mxu1 %v5542_v5 }
 0x288   :  { %5338 = vmatpush3.bf16.msra.mxu0 %v5543_v6 }
 0x289   :  { %5360 = vmatpush3.bf16.msra.mxu1 %v5544_v7  ;;  %5339 = vmatprep.subr.bf16.mxu0 %v5545_v10 }
 0x28a   :  { %5361 = vmatprep.subr.bf16.mxu1 %v5546_v4 }
 0x28c   :  { %5340 = vmatpush3.bf16.msra.mxu0 %v5547_v11 }
 0x28d   :  { %5362 = vmatpush3.bf16.msra.mxu1 %v5548_v8  ;;  %5341 = vmatprep.subr.bf16.mxu0 %v5549_v14 }
 0x28e   :  { %5363 = vmatprep.subr.bf16.mxu1 %v5550_v16 }
 0x290   :  { %5342 = vmatpush3.bf16.msra.mxu0 %v5551_v17  ;;  %v5585_v17 = vld [vmem:[#allocation10] sm:$0xff]  }
 0x291   :  { %5364 = vmatpush3.bf16.msra.mxu1 %v5552_v18  ;;  %5371 = vmatprep.subr.bf16.mxu0 %v5553_v19 }
 0x292   :  { %5393 = vmatprep.subr.bf16.mxu1 %v5554_v21  ;;  %v5586_v21 = vld [vmem:[#allocation10 + $0x8] sm:$0xff]  }
 0x293   :  { %4474 = vmatmul.mubr.bf16.vlgmr.msra.gmra.mrb[8].mxu0 %v3914_v53 }
 0x294   :  { %4514 = vmatmul.mubr.bf16.vlgmr.msra.gmra.mrb[8].mxu1 %v3916_v12  ;;  %5372 = vmatpush3.bf16.msra.mxu0 %v5555_v57  ;;  %v5588_v57 = vld [vmem:[#allocation10 + $0x18] sm:$0xff]  }
 0x295   :  { %5394 = vmatpush3.bf16.msra.mxu1 %v5556_v26  ;;  %5373 = vmatprep.subr.bf16.mxu0 %v5557_v27  ;;  %v5589_v26 = vld [vmem:[#allocation10 + $0x20] sm:$0xff]   ;;  %v5253_v12 = vld [vmem:[#allocation8] ss:$0 sm:$0xff] }
 0x296   :  { %5395 = vmatprep.subr.bf16.mxu1 %v5558_v28 }
 0x298   :  { %5374 = vmatpush3.bf16.msra.mxu0 %v5559_v29 }
 0x299   :  { %5396 = vmatpush3.bf16.msra.mxu1 %v5560_v30  ;;  %5375 = vmatprep.subr.bf16.mxu0 %v5561_v9 }
 0x29a   :  { %5397 = vmatprep.subr.bf16.mxu1 %v5562_v31 }
 0x29c   :  { %5376 = vmatpush3.bf16.msra.mxu0 %v5563_v32 }
 0x29d   :  { %5398 = vmatpush3.bf16.msra.mxu1 %v5564_v13  ;;  %5377 = vmatprep.subr.bf16.mxu0 %v5565_v33 }
 0x29e   :  { %5399 = vmatprep.subr.bf16.mxu1 %v5566_v15 }
 0x2a0   :  { %5378 = vmatpush3.bf16.msra.mxu0 %v5567_v35 }
 0x2a1   :  { %5400 = vmatpush3.bf16.msra.mxu1 %v5568_v37  ;;  %5379 = vmatprep.subr.bf16.mxu0 %v5569_v25  ;;  %v5590_v37 = vld [vmem:[#allocation10 + $0x28] sm:$0xff]   ;;  %v5591_v25 = vld [vmem:[#allocation10 + $0x30] sm:$0xff]  }
 0x2a2   :  { %5401 = vmatprep.subr.bf16.mxu1 %v5570_v23  ;;  %v5592_v23 = vld [vmem:[#allocation10 + $0x38] sm:$0xff]  }
 0x2a4   :  { %5380 = vmatpush3.bf16.msra.mxu0 %v5571_v38 }
 0x2a5   :  { %5402 = vmatpush3.bf16.msra.mxu1 %v5572_v40  ;;  %5381 = vmatprep.subr.bf16.mxu0 %v5573_v41 }
 0x2a6   :  { %5403 = vmatprep.subr.bf16.mxu1 %v5574_v42 }
 0x2a8   :  { %5382 = vmatpush3.bf16.msra.mxu0 %v5575_v36 }
 0x2a9   :  { %5404 = vmatpush3.bf16.msra.mxu1 %v5576_v43  ;;  %5383 = vmatprep.subr.bf16.mxu0 %v5577_v44 }
 0x2aa   :  { %5405 = vmatprep.subr.bf16.mxu1 %v5578_v45 }
 0x2ac   :  { %5384 = vmatpush3.bf16.msra.mxu0 %v5579_v34 }
 0x2ad   :  { %5406 = vmatpush3.bf16.msra.mxu1 %v5580_v47  ;;  %5385 = vmatprep.subr.bf16.mxu0 %v5581_v48 }
 0x2ae   :  { %5407 = vmatprep.subr.bf16.mxu1 %v5582_v49 }
 0x2b0   :  { %5386 = vmatpush3.bf16.msra.mxu0 %v5583_v50 }
 0x2b1   :  { %5408 = vmatpush3.bf16.msra.mxu1 %v5584_v24  ;;  %5424 = vmatprep.subr.bf16.mxu0 %v5783_v51 }
 0x346   :  { %v3735_v63 = vpop.f32.mrb[4].mxu0  ;;  %v3899_v1 = vpop.f32.mrb[4].mxu1 }
 0x347   :  { %v5448_v0 = vadd.f32 %v3735_v63, %v641_v58  ;;  %v3737_v2 = vpop.f32.mrb[5].mxu0  ;;  %v5450_v39 = vadd.f32 %v3899_v1, %v649_v59  ;;  %v3901_v5 = vpop.f32.mrb[5].mxu1 }
 0x348   :  { %v5449_v3 = vadd.f32 %v3737_v2, %v645_v61  ;;  %v3739_v6 = vpop.f32.mrb[6].mxu0  ;;  %v5451_v7 = vadd.f32 %v3901_v5, %v653_v62  ;;  %v3903_v10 = vpop.f32.mrb[6].mxu1 }
 0x349   :  { %5601 = vtanh.f32 %v5448_v0  ;;  %v3740_v46 = vpop.f32.mrb[7].mxu0  ;;  %v3904_v4 = vpop.f32.mrb[7].mxu1 }
 0x34a   :  { %5603 = vtanh.f32 %v5450_v39 }
 0x34b   :  { %5605 = vtanh.f32 %v5449_v3 }
 0x34c   :  { %5607 = vtanh.f32 %v5451_v7 }
 0x353   :  { %v5602_v11 = vpop.eup %5601 }
 0x354   :  { %v5604_v8 = vpop.eup %5603  ;;  %v3918_v18 = vpack.c.bf16 %v5602_v11, %v5602_v11 }
 0x355   :  { %v5606_v14 = vpop.eup %5605  ;;  %v3920_v20 = vpack.c.bf16 %v5604_v8, %v5604_v8 }
 0x356   :  { %v5608_v60 = vpop.eup %5607  ;;  %v3919_v16 = vpack.c.bf16 %v5606_v14, %v5606_v14 }
 0x357   :  { %v3921_v19 = vpack.c.bf16 %v5608_v60, %v5608_v60 }
 0x358   :  { %4553 = vmatprep.mubr.bf16.mxu0 %v3919_v16 }
 0x359   :  { %4593 = vmatprep.mubr.bf16.mxu1 %v3921_v19  ;;  %4554 = vmatmul.mubr.bf16.vlgmr.msra.gmra.mrb[12].mxu0 %v3918_v18 }
 0x35a   :  { %4594 = vmatmul.mubr.bf16.vlgmr.msra.gmra.mrb[12].mxu1 %v3920_v20  ;;  %5425 = vmatpush3.bf16.msra.mxu0 %v5585_v17 }
 0x35b   :  { %5426 = vmatprep.subr.bf16.mxu0 %v5783_v51  ;;  %5440 = vmatprep.mubr.msk.bf16.mxu0 %vm5784_vm0, %v5783_v51 }
 0x35e   :  { %5427 = vmatpush3.bf16.msra.mxu0 %v5586_v21 }
 0x35f   :  { %5428 = vmatprep.subr.bf16.mxu0 %v5783_v51 }
 0x362   :  { %5429 = vmatpush3.bf16.msra.mxu0 %v5587_v22 }
 0x363   :  { %5430 = vmatprep.subr.bf16.mxu0 %v5783_v51 }
 0x366   :  { %v5343_v53 = vpop.f32.mrb[8].mxu0  ;;  %5431 = vmatpush3.bf16.msra.mxu0 %v5588_v57 }
 0x367   :  { %v5365_v27 = vpop.f32.mrb[8].mxu1  ;;  %v5344_v28 = vpop.f32.mrb[9].mxu0  ;;  %5432 = vmatprep.subr.bf16.mxu0 %v5783_v51 }
 0x368   :  { %v5345_v29 = vadd.f32 %v5344_v28, %v5343_v53  ;;  %v5366_v30 = vpop.f32.mrb[9].mxu1  ;;  %v5346_v9 = vpop.f32.mrb[10].mxu0 }
 0x369   :  { %v5367_v31 = vadd.f32 %v5366_v30, %v5365_v27  ;;  %v5368_v32 = vpop.f32.mrb[10].mxu1  ;;  %v5347_v13 = vpop.f32.mrb[11].mxu0 }
 0x36a   :  { %v4476_v33 = vadd.f32 %v5345_v29, %v5253_v12  ;;  %v5369_v15 = vpop.f32.mrb[11].mxu1  ;;  %5433 = vmatpush3.bf16.msra.mxu0 %v5589_v26 }
 0x36b   :  { %5434 = vmatprep.subr.bf16.mxu0 %v5783_v51 }
 0x36c   :  { %v4516_v35 = vadd.f32 %v5367_v31, %v4476_v33 }
 0x36e   :  { %5435 = vmatpush3.bf16.msra.mxu0 %v5590_v37 }
 0x36f   :  { %5436 = vmatprep.subr.bf16.mxu0 %v5783_v51 }
 0x372   :  { %5437 = vmatpush3.bf16.msra.mxu0 %v5591_v25 }
 0x373   :  { %5438 = vmatprep.subr.bf16.mxu0 %v5783_v51 }
 0x376   :  { %5439 = vmatpush3.bf16.msra.mxu0 %v5592_v23 }
 0x42c   :  { %v5387_v38 = vpop.f32.mrb[12].mxu0 }
 0x42d   :  { %v5409_v40 = vpop.f32.mrb[12].mxu1  ;;  %v5388_v41 = vpop.f32.mrb[13].mxu0 }
 0x42e   :  { %v5389_v42 = vadd.f32 %v5388_v41, %v5387_v38  ;;  %v5410_v36 = vpop.f32.mrb[13].mxu1  ;;  %v5390_v43 = vpop.f32.mrb[14].mxu0 }
 0x42f   :  { %v5411_v44 = vadd.f32 %v5410_v36, %v5409_v40  ;;  %v5412_v45 = vpop.f32.mrb[14].mxu1  ;;  %v5391_v34 = vpop.f32.mrb[15].mxu0 }
 0x430   :  { %v4556_v47 = vadd.f32 %v5389_v42, %v4516_v35  ;;  %v5413_v48 = vpop.f32.mrb[15].mxu1 }
 0x432   :  { %v4596_v49 = vadd.f32 %v5411_v44, %v4556_v47 }
 0x434   :  { %v4601_v50 = vmax.f32 %v4596_v49, 0.0 }
 0x436   :  { %v4602_v24 = vpack.c.bf16 %v4601_v50, %v4601_v50 }
 0x438   :  { %5441 = vmatmul.mubr.bf16.vlgmr.msra.gmra.mrb[16].mxu0 %v4602_v24 }
 0x50b   :  { %v4708_v55 = vpop.f32.mrb[16].mxu0 }
 0x50c   :  { %v4709_v51 = vadd.f32 %v5318_v52, %v4708_v55  ;;  %v5442_v54 = vpop.f32.mrb[17].mxu0 }
 0x50d   :  { %v4711_v56 = vpop.f32.mrb[18].mxu0 }
 0x50e   :  { %4714 = vst [vmem:[#allocation13] sm:$0xff] %v4709_v51  ;;  %v5443_v58 = vpop.f32.mrb[19].mxu0 }
 0x50f   :  { %5752 = shalt.err (!%p5749_p10)
}
 0x510   :  { %s5753_s4 = scalar_lea.hbm %s6042_s7, 128 }
 0x511   :  { %p5754_p11 = scmp.ne.s32.totalorder %s6042_s7, %s5753_s4  ;;  %p5757_p12 = scmp.lt.u32.totalorder %s5753_s4, %s6042_s7 }
 0x513   :  { %p5759_p13 = pnand %p5757_p12, %p5754_p11 }
 0x515   :  { %5762 = shalt.err (!%p5759_p13)
}
 0x516   :  { %4724 = dma.vmem_to_hbm [thread:$0]  %s4722_s9, 128, %s6042_s7, [#allocation4]  }
 0x517   :  { %5771 = dma.done.wait [#allocation4], 128  }
 0x518   :  { %5772 = vsyncadd [#allocation4], 4294967168 }
 0x519   :  { %4728 = vsyncpa [#allocation3], 1 }
 0x51a   :  { %4729 = vsyncpa [#allocation6], 1 }
 0x51b   :  { %4730 = vsyncpa [#allocation9], 1 }
 0x51c   :  { %4731 = vsyncpa [#allocation12], 1 }
 0x51d   :  { %4732 = vsyncpa [#allocation4], 1 }

</bundles_post_ra>
